<compile_context>
chip_gen: v5e
topology: v5e:2x2
jax: 0.10.0
libtpu: 0.0.40
codegen_flags: <defaults>
</compile_context>

<pallas_src>
import numpy as np
import jax
import jax.numpy as jnp
from jax.experimental import pallas as pl
from jax.experimental.pallas import tpu as pltpu


# ---------------------------------------------------------------------------
# Fused kernel: conv1+ReLU -> conv2+ReLU -> conv3+ReLU -> spatial mean
# ---------------------------------------------------------------------------
def _fused_condition_kernel(p1_ref, w1_ref, gs2_ref, w2_ref, gs3_ref, w3_ref,
                            o_ref, t2_ref, t3_ref):
    # p1_ref : (1, P1, KF1P)  bf16  layer-1 im2col patches (+ ones column), one image
    # w1_ref : (KF1P, CW)     bf16  conv1 weights; row kf1 = [b1, 1]
    # gs2_ref: (9*P2, P1)     bf16  ZeroPad2d(1)+stride-2 im2col gather, layer 2 (tap-major)
    # w2_ref : (9*CW, CW)     bf16  conv2 weights; centre-tap ones row = [b2, 1]
    # gs3_ref: (9*P3, P2)     bf16  same gather, layer 3
    # w3_ref : (9*CW, 128)    bf16  conv3 weights; centre-tap ones row = [b3, 0..]; cols >= nf are 0
    # o_ref  : (1, 1, 128)    f32   per-image channel mean (lane-dense store)
    # t2_ref : (P2, 9*CW)     bf16  VMEM scratch: assembled layer-2 taps
    # t3_ref : (P3, 9*CW)     bf16  VMEM scratch: assembled layer-3 taps
    cw = w1_ref.shape[1]
    p2 = gs2_ref.shape[0] // 9
    p3 = gs3_ref.shape[0] // 9

    # ---- layer 1: one GEMM (bias + ones channel folded into row kf1) -------
    y1 = jnp.dot(p1_ref[0], w1_ref[...], preferred_element_type=jnp.float32)
    y1 = jnp.maximum(y1, 0.0).astype(jnp.bfloat16)           # (P1, CW); y1[:, nf] == 1

    # ---- layer 2: 9 independent gather copies -> ONE long-K GEMM -----------
    for t in range(9):
        tap = jnp.dot(gs2_ref[pl.ds(t * p2, p2), :], y1,
                      preferred_element_type=jnp.float32)     # exact 0/1 copy of y1 rows
        t2_ref[:, pl.ds(t * cw, cw)] = tap.astype(jnp.bfloat16)
    y2 = jnp.dot(t2_ref[...], w2_ref[...], preferred_element_type=jnp.float32)
    y2 = jnp.maximum(y2, 0.0).astype(jnp.bfloat16)            # (P2, CW); y2[:, nf] == 1

    # ---- layer 3: same, lane-dense (128-wide) output ------------------------
    for t in range(9):
        tap = jnp.dot(gs3_ref[pl.ds(t * p3, p3), :], y2,
                      preferred_element_type=jnp.float32)
        t3_ref[:, pl.ds(t * cw, cw)] = tap.astype(jnp.bfloat16)
    y3 = jnp.dot(t3_ref[...], w3_ref[...], preferred_element_type=jnp.float32)
    y3 = jnp.maximum(y3, 0.0)                                  # (P3, 128) f32

    # ---- global average pool over spatial positions -------------------------
    o_ref[0] = jnp.mean(y3, axis=0, keepdims=True)             # (1, 128)


# ---------------------------------------------------------------------------
# One-time (init-time) constant packing — pure host-side numpy
# ---------------------------------------------------------------------------
def _pad_gather_matrix(h_in, w_in, k=3, stride=2):
    """0/1 matrix folding ZeroPad2d(1) + KxK/stride-s im2col, tap-major rows:
    (GS @ y)[t*P + q, :] == zero_padded(y)[s*oh + kh, s*ow + kw, :]
    with t = kh*k + kw, q = oh*w_out + ow, y rows in row-major (h, w) order."""
    hp, wp = h_in + 2, w_in + 2
    h_out = (hp - k) // stride + 1
    w_out = (wp - k) // stride + 1
    p = h_out * w_out
    gs = np.zeros((k * k * p, h_in * w_in), np.float32)
    for kh in range(k):
        for kw in range(k):
            t = kh * k + kw
            for oh in range(h_out):
                for ow in range(w_out):
                    ih = stride * oh + kh - 1
                    iw = stride * ow + kw - 1
                    if 0 <= ih < h_in and 0 <= iw < w_in:
                        gs[t * p + oh * w_out + ow, ih * w_in + iw] = 1.0
    return gs, h_out, w_out


def pack_condition(params, h, w, in_nc=3, nf=32):
    """Precompute every constant operand of the fused kernel (call once)."""
    k1, stride = 7, 2
    cw = nf + 1                                   # nf channels + a constant-one channel
    kf1 = k1 * k1 * in_nc                         # 147
    kf1p = -(-(kf1 + 1) // 16) * 16               # +1 ones column, rounded up to x16 -> 160

    # layer-1 output size (ZeroPad2d(1) + 7x7 / stride 2)
    h1 = (h + 2 - k1) // stride + 1
    w1o = (w + 2 - k1) // stride + 1
    p1 = h1 * w1o

    # flat gather indices for the wrapper-side layer-1 im2col (ONE XLA gather/call)
    idx = np.empty((p1, kf1), np.int32)
    for oh in range(h1):
        for ow in range(w1o):
            q, col = oh * w1o + ow, 0
            for kh in range(k1):
                for kw in range(k1):
                    for c in range(in_nc):
                        idx[q, col] = ((stride * oh + kh) * (w + 2)
                                       + (stride * ow + kw)) * in_nc + c
                        col += 1

    # pad+gather matrices for layers 2 / 3
    gs2, h2, w2o = _pad_gather_matrix(h1, w1o, 3, stride)
    gs3, _, _ = _pad_gather_matrix(h2, w2o, 3, stride)

    # conv1: (kf1p, cw); row kf1 carries [b1, 1] (hit by the patches' ones column)
    w1p = np.zeros((kf1p, cw), np.float32)
    w1p[:kf1, :nf] = np.asarray(params["w1"], np.float32).reshape(kf1, nf)
    w1p[kf1, :nf] = np.asarray(params["b1"], np.float32)
    w1p[kf1, nf] = 1.0

    def stack_3x3(wk, bk, cw_out, keep_ones):
        wk = np.asarray(wk, np.float32)           # (3, 3, nf, nf) HWIO
        bk = np.asarray(bk, np.float32)
        m = np.zeros((9 * cw, cw_out), np.float32)
        for kh in range(3):
            for kw in range(3):
                t = kh * 3 + kw
                m[t * cw:t * cw + nf, :nf] = wk[kh, kw]
        centre = 4                                 # (kh,kw)=(1,1): always in-bounds -> carries bias
        m[centre * cw + nf, :nf] = bk
        if keep_ones:
            m[centre * cw + nf, nf] = 1.0          # keeps the ones channel alive downstream
        return m

    w2p = stack_3x3(params["w2"], params["b2"], cw, True)     # (297, 33)
    w3p = stack_3x3(params["w3"], params["b3"], 128, False)   # (297, 128), cols >= nf zero

    return dict(
        im2col_idx=jnp.asarray(idx.reshape(-1)),
        w1p=jnp.asarray(w1p, jnp.bfloat16),
        gs2=jnp.asarray(gs2, jnp.bfloat16),
        w2p=jnp.asarray(w2p, jnp.bfloat16),
        gs3=jnp.asarray(gs3, jnp.bfloat16),
        w3p=jnp.asarray(w3p, jnp.bfloat16),
    )


# ---------------------------------------------------------------------------
# Forward pass (jit this) — only layout glue on x + one pallas_call
# ---------------------------------------------------------------------------
def condition_forward(x_nchw, consts):
    w1p, w2p, w3p = consts["w1p"], consts["w2p"], consts["w3p"]
    gs2, gs3, idx = consts["gs2"], consts["gs3"], consts["im2col_idx"]

    kf1p, cw = w1p.shape
    nf = cw - 1
    p1 = gs2.shape[1]
    p2 = gs2.shape[0] // 9
    p3 = gs3.shape[0] // 9
    cw_out = w3p.shape[1]
    kf1 = idx.shape[0] // p1

    x = jnp.transpose(x_nchw, (0, 2, 3, 1))                    # NCHW -> NHWC
    n = x.shape[0]
    x_pad = jnp.pad(x, ((0, 0), (1, 1), (1, 1), (0, 0)))       # nn.ZeroPad2d(1)
    x_flat = x_pad.reshape(n, -1)
    patches = jnp.take(x_flat, idx, axis=1).reshape(n, p1, kf1)
    ones = jnp.ones((n, p1, 1), patches.dtype)                 # folds conv1 bias
    zpad = jnp.zeros((n, p1, kf1p - kf1 - 1), patches.dtype)
    patches = jnp.concatenate([patches, ones, zpad], axis=2).astype(jnp.bfloat16)
    # TODO(synk): at CSRNet-scale resolutions move this im2col in-kernel (tap
    # accumulation over a P1 grid axis) instead of materialising it in HBM.

    out = pl.pallas_call(
        _fused_condition_kernel,
        out_shape=jax.ShapeDtypeStruct((n, 1, cw_out), jnp.float32),
        grid=(n,),
        in_specs=[
            pl.BlockSpec((1, p1, kf1p), lambda i: (i, 0, 0)),   # per-image patches
            pl.BlockSpec((kf1p, cw), lambda i: (0, 0)),         # w1 (+b1, ones col)
            pl.BlockSpec((9 * p2, p1), lambda i: (0, 0)),       # layer-2 pad+gather
            pl.BlockSpec((9 * cw, cw), lambda i: (0, 0)),       # w2 (+b2 via ones ch)
            pl.BlockSpec((9 * p3, p2), lambda i: (0, 0)),       # layer-3 pad+gather
            pl.BlockSpec((9 * cw, cw_out), lambda i: (0, 0)),   # w3 (+b3), lane-dense
        ],
        out_specs=pl.BlockSpec((1, 1, cw_out), lambda i: (i, 0, 0)),
        scratch_shapes=[
            pltpu.VMEM((p2, 9 * cw), jnp.bfloat16),
            pltpu.VMEM((p3, 9 * cw), jnp.bfloat16),
        ],
        compiler_params=pltpu.CompilerParams(
            dimension_semantics=("parallel",)),
    )(patches, w1p, gs2, w2p, gs3, w3p)

    return out[:, 0, :nf]                                       # (N, nf)


# ---------------------------------------------------------------------------
# Params init (HWIO, PyTorch-default-like bounds) and pure-JAX reference
# ---------------------------------------------------------------------------
def init_params(key, in_nc=3, nf=32):
    ks = jax.random.split(key, 6)

    def conv_init(kw_key, kb_key, k, cin, cout):
        bound = 1.0 / (cin * k * k) ** 0.5
        w = jax.random.uniform(kw_key, (k, k, cin, cout), jnp.float32, -bound, bound)
        b = jax.random.uniform(kb_key, (cout,), jnp.float32, -bound, bound)
        return w, b

    w1, b1 = conv_init(ks[0], ks[1], 7, in_nc, nf)
    w2, b2 = conv_init(ks[2], ks[3], 3, nf, nf)
    w3, b3 = conv_init(ks[4], ks[5], 3, nf, nf)
    return dict(w1=w1, b1=b1, w2=w2, b2=b2, w3=w3, b3=b3)


def condition_ref(x_nchw, params):
    """Reference with the same bf16-operand / f32-accumulate numerics."""
    x = jnp.transpose(x_nchw, (0, 2, 3, 1)).astype(jnp.bfloat16)

    def conv(hh, w, b):
        y = jax.lax.conv_general_dilated(
            hh, w.astype(jnp.bfloat16),
            window_strides=(2, 2), padding=((1, 1), (1, 1)),
            dimension_numbers=("NHWC", "HWIO", "NHWC"),
            preferred_element_type=jnp.float32)
        b16 = b.astype(jnp.bfloat16).astype(jnp.float32)   # kernel folds bf16 biases
        return jnp.maximum(y + b16, 0.0)

    hh = conv(x, params["w1"], params["b1"]).astype(jnp.bfloat16)
    hh = conv(hh, params["w2"], params["b2"]).astype(jnp.bfloat16)
    hh = conv(hh, params["w3"], params["b3"])
    return jnp.mean(hh, axis=(1, 2))


if __name__ == "__main__":
    key = jax.random.PRNGKey(0)
    k_x, k_p = jax.random.split(key)
    # NCHW input matching the PyTorch module defaults: (N=2, C=3, H=16, W=16)
    x = jax.random.normal(k_x, (2, 3, 16, 16), jnp.float32)
    params = init_params(k_p, in_nc=3, nf=32)
    consts = pack_condition(params, h=16, w=16, in_nc=3, nf=32)   # once, at init

    fwd = jax.jit(condition_forward)
    out = jax.block_until_ready(fwd(x, consts))
    assert out.shape == (2, 32), out.shape

    ref = condition_ref(x, params)
    err = float(jnp.max(jnp.abs(out - ref)))
    assert jnp.allclose(out, ref, atol=2e-3, rtol=2e-3), err
    print("KERNEL_OK")
</pallas_src>

<mosaic_0001>
module attributes {stable_mosaic.version = 11 : i64} {
  func.func @_fused_condition_kernel(%arg0: i32, %arg1: memref<1x36x160xbf16, #tpu.memory_space<vmem>>, %arg2: memref<160x33xbf16, #tpu.memory_space<vmem>>, %arg3: memref<81x36xbf16, #tpu.memory_space<vmem>>, %arg4: memref<297x33xbf16, #tpu.memory_space<vmem>>, %arg5: memref<36x9xbf16, #tpu.memory_space<vmem>>, %arg6: memref<297x128xbf16, #tpu.memory_space<vmem>>, %arg7: memref<1x1x128xf32, #tpu.memory_space<vmem>>, %arg8: memref<9x297xbf16, #tpu.memory_space<vmem>>, %arg9: memref<4x297xbf16, #tpu.memory_space<vmem>>) attributes {dimension_semantics = [#tpu.dimension_semantics<parallel>], iteration_bounds = array<i64: 2>, scalar_prefetch = 0 : i64, scratch_operands = 2 : i64, tpu.core_type = #tpu.core_type<tc>, window_params = [{transform_indices = @transform_0, window_bounds = array<i64: 1, 36, 160>}, {pipeline_mode = #tpu.pipeline_mode<synchronous>, transform_indices = @transform_1, window_bounds = array<i64: 160, 33>}, {pipeline_mode = #tpu.pipeline_mode<synchronous>, transform_indices = @transform_2, window_bounds = array<i64: 81, 36>}, {pipeline_mode = #tpu.pipeline_mode<synchronous>, transform_indices = @transform_3, window_bounds = array<i64: 297, 33>}, {pipeline_mode = #tpu.pipeline_mode<synchronous>, transform_indices = @transform_4, window_bounds = array<i64: 36, 9>}, {pipeline_mode = #tpu.pipeline_mode<synchronous>, transform_indices = @transform_5, window_bounds = array<i64: 297, 128>}, {transform_indices = @transform_6, window_bounds = array<i64: 1, 1, 128>}]} {
    %c0 = arith.constant 0 : index
    %c0_0 = arith.constant 0 : index
    %c0_1 = arith.constant 0 : index
    %0 = vector.load %arg1[%c0, %c0_0, %c0_1] : memref<1x36x160xbf16, #tpu.memory_space<vmem>>, vector<1x36x160xbf16>
    %1 = vector.shape_cast %0 : vector<1x36x160xbf16> to vector<36x160xbf16>
    %c0_2 = arith.constant 0 : index
    %c0_3 = arith.constant 0 : index
    %2 = vector.load %arg2[%c0_2, %c0_3] : memref<160x33xbf16, #tpu.memory_space<vmem>>, vector<160x33xbf16>
    %cst = arith.constant dense<0.000000e+00> : vector<36x33xf32>
    %3 = tpu.matmul %1, %2, %cst {dimension_numbers = #tpu.dot_dimension_numbers<[1], [0], [0], [1], [0, 0, 1, 1], [], []>} : vector<36x160xbf16>, vector<160x33xbf16>, vector<36x33xf32> -> vector<36x33xf32>
    %cst_4 = arith.constant 0.000000e+00 : f32
    %4 = vector.broadcast %cst_4 : f32 to vector<36x33xf32>
    %5 = arith.maximumf %3, %4 : vector<36x33xf32>
    %6 = arith.truncf %5 : vector<36x33xf32> to vector<36x33xbf16>
    %c0_5 = arith.constant 0 : index
    %c0_6 = arith.constant 0 : index
    %7 = vector.load %arg3[%c0_5, %c0_6] : memref<81x36xbf16, #tpu.memory_space<vmem>>, vector<9x36xbf16>
    %cst_7 = arith.constant dense<0.000000e+00> : vector<9x33xf32>
    %8 = tpu.matmul %7, %6, %cst_7 {dimension_numbers = #tpu.dot_dimension_numbers<[1], [0], [0], [1], [0, 0, 1, 1], [], []>} : vector<9x36xbf16>, vector<36x33xbf16>, vector<9x33xf32> -> vector<9x33xf32>
    %9 = arith.truncf %8 : vector<9x33xf32> to vector<9x33xbf16>
    %c0_8 = arith.constant 0 : index
    %c0_9 = arith.constant 0 : index
    %10 = vector.load %arg8[%c0_8, %c0_9] : memref<9x297xbf16, #tpu.memory_space<vmem>>, vector<9x33xbf16>
    tpu.vector_store %arg8[%c0_8, %c0_9], %9 {strides = array<i32>} : memref<9x297xbf16, #tpu.memory_space<vmem>>, vector<9x33xbf16>,
    %c9 = arith.constant 9 : index
    %c0_10 = arith.constant 0 : index
    %11 = vector.load %arg3[%c9, %c0_10] : memref<81x36xbf16, #tpu.memory_space<vmem>>, vector<9x36xbf16>
    %cst_11 = arith.constant dense<0.000000e+00> : vector<9x33xf32>
    %12 = tpu.matmul %11, %6, %cst_11 {dimension_numbers = #tpu.dot_dimension_numbers<[1], [0], [0], [1], [0, 0, 1, 1], [], []>} : vector<9x36xbf16>, vector<36x33xbf16>, vector<9x33xf32> -> vector<9x33xf32>
    %13 = arith.truncf %12 : vector<9x33xf32> to vector<9x33xbf16>
    %c0_12 = arith.constant 0 : index
    %c33 = arith.constant 33 : index
    %14 = vector.load %arg8[%c0_12, %c33] : memref<9x297xbf16, #tpu.memory_space<vmem>>, vector<9x33xbf16>
    tpu.vector_store %arg8[%c0_12, %c33], %13 {strides = array<i32>} : memref<9x297xbf16, #tpu.memory_space<vmem>>, vector<9x33xbf16>,
    %c18 = arith.constant 18 : index
    %c0_13 = arith.constant 0 : index
    %15 = vector.load %arg3[%c18, %c0_13] : memref<81x36xbf16, #tpu.memory_space<vmem>>, vector<9x36xbf16>
    %cst_14 = arith.constant dense<0.000000e+00> : vector<9x33xf32>
    %16 = tpu.matmul %15, %6, %cst_14 {dimension_numbers = #tpu.dot_dimension_numbers<[1], [0], [0], [1], [0, 0, 1, 1], [], []>} : vector<9x36xbf16>, vector<36x33xbf16>, vector<9x33xf32> -> vector<9x33xf32>
    %17 = arith.truncf %16 : vector<9x33xf32> to vector<9x33xbf16>
    %c0_15 = arith.constant 0 : index
    %c66 = arith.constant 66 : index
    %18 = vector.load %arg8[%c0_15, %c66] : memref<9x297xbf16, #tpu.memory_space<vmem>>, vector<9x33xbf16>
    tpu.vector_store %arg8[%c0_15, %c66], %17 {strides = array<i32>} : memref<9x297xbf16, #tpu.memory_space<vmem>>, vector<9x33xbf16>,
    %c27 = arith.constant 27 : index
    %c0_16 = arith.constant 0 : index
    %19 = vector.load %arg3[%c27, %c0_16] : memref<81x36xbf16, #tpu.memory_space<vmem>>, vector<9x36xbf16>
    %cst_17 = arith.constant dense<0.000000e+00> : vector<9x33xf32>
    %20 = tpu.matmul %19, %6, %cst_17 {dimension_numbers = #tpu.dot_dimension_numbers<[1], [0], [0], [1], [0, 0, 1, 1], [], []>} : vector<9x36xbf16>, vector<36x33xbf16>, vector<9x33xf32> -> vector<9x33xf32>
    %21 = arith.truncf %20 : vector<9x33xf32> to vector<9x33xbf16>
    %c0_18 = arith.constant 0 : index
    %c99 = arith.constant 99 : index
    %22 = vector.load %arg8[%c0_18, %c99] : memref<9x297xbf16, #tpu.memory_space<vmem>>, vector<9x33xbf16>
    tpu.vector_store %arg8[%c0_18, %c99], %21 {strides = array<i32>} : memref<9x297xbf16, #tpu.memory_space<vmem>>, vector<9x33xbf16>,
    %c36 = arith.constant 36 : index
    %c0_19 = arith.constant 0 : index
    %23 = vector.load %arg3[%c36, %c0_19] : memref<81x36xbf16, #tpu.memory_space<vmem>>, vector<9x36xbf16>
    %cst_20 = arith.constant dense<0.000000e+00> : vector<9x33xf32>
    %24 = tpu.matmul %23, %6, %cst_20 {dimension_numbers = #tpu.dot_dimension_numbers<[1], [0], [0], [1], [0, 0, 1, 1], [], []>} : vector<9x36xbf16>, vector<36x33xbf16>, vector<9x33xf32> -> vector<9x33xf32>
    %25 = arith.truncf %24 : vector<9x33xf32> to vector<9x33xbf16>
    %c0_21 = arith.constant 0 : index
    %c132 = arith.constant 132 : index
    %26 = vector.load %arg8[%c0_21, %c132] : memref<9x297xbf16, #tpu.memory_space<vmem>>, vector<9x33xbf16>
    tpu.vector_store %arg8[%c0_21, %c132], %25 {strides = array<i32>} : memref<9x297xbf16, #tpu.memory_space<vmem>>, vector<9x33xbf16>,
    %c45 = arith.constant 45 : index
    %c0_22 = arith.constant 0 : index
    %27 = vector.load %arg3[%c45, %c0_22] : memref<81x36xbf16, #tpu.memory_space<vmem>>, vector<9x36xbf16>
    %cst_23 = arith.constant dense<0.000000e+00> : vector<9x33xf32>
    %28 = tpu.matmul %27, %6, %cst_23 {dimension_numbers = #tpu.dot_dimension_numbers<[1], [0], [0], [1], [0, 0, 1, 1], [], []>} : vector<9x36xbf16>, vector<36x33xbf16>, vector<9x33xf32> -> vector<9x33xf32>
    %29 = arith.truncf %28 : vector<9x33xf32> to vector<9x33xbf16>
    %c0_24 = arith.constant 0 : index
    %c165 = arith.constant 165 : index
    %30 = vector.load %arg8[%c0_24, %c165] : memref<9x297xbf16, #tpu.memory_space<vmem>>, vector<9x33xbf16>
    tpu.vector_store %arg8[%c0_24, %c165], %29 {strides = array<i32>} : memref<9x297xbf16, #tpu.memory_space<vmem>>, vector<9x33xbf16>,
    %c54 = arith.constant 54 : index
    %c0_25 = arith.constant 0 : index
    %31 = vector.load %arg3[%c54, %c0_25] : memref<81x36xbf16, #tpu.memory_space<vmem>>, vector<9x36xbf16>
    %cst_26 = arith.constant dense<0.000000e+00> : vector<9x33xf32>
    %32 = tpu.matmul %31, %6, %cst_26 {dimension_numbers = #tpu.dot_dimension_numbers<[1], [0], [0], [1], [0, 0, 1, 1], [], []>} : vector<9x36xbf16>, vector<36x33xbf16>, vector<9x33xf32> -> vector<9x33xf32>
    %33 = arith.truncf %32 : vector<9x33xf32> to vector<9x33xbf16>
    %c0_27 = arith.constant 0 : index
    %c198 = arith.constant 198 : index
    %34 = vector.load %arg8[%c0_27, %c198] : memref<9x297xbf16, #tpu.memory_space<vmem>>, vector<9x33xbf16>
    tpu.vector_store %arg8[%c0_27, %c198], %33 {strides = array<i32>} : memref<9x297xbf16, #tpu.memory_space<vmem>>, vector<9x33xbf16>,
    %c63 = arith.constant 63 : index
    %c0_28 = arith.constant 0 : index
    %35 = vector.load %arg3[%c63, %c0_28] : memref<81x36xbf16, #tpu.memory_space<vmem>>, vector<9x36xbf16>
    %cst_29 = arith.constant dense<0.000000e+00> : vector<9x33xf32>
    %36 = tpu.matmul %35, %6, %cst_29 {dimension_numbers = #tpu.dot_dimension_numbers<[1], [0], [0], [1], [0, 0, 1, 1], [], []>} : vector<9x36xbf16>, vector<36x33xbf16>, vector<9x33xf32> -> vector<9x33xf32>
    %37 = arith.truncf %36 : vector<9x33xf32> to vector<9x33xbf16>
    %c0_30 = arith.constant 0 : index
    %c231 = arith.constant 231 : index
    %38 = vector.load %arg8[%c0_30, %c231] : memref<9x297xbf16, #tpu.memory_space<vmem>>, vector<9x33xbf16>
    tpu.vector_store %arg8[%c0_30, %c231], %37 {strides = array<i32>} : memref<9x297xbf16, #tpu.memory_space<vmem>>, vector<9x33xbf16>,
    %c72 = arith.constant 72 : index
    %c0_31 = arith.constant 0 : index
    %39 = vector.load %arg3[%c72, %c0_31] : memref<81x36xbf16, #tpu.memory_space<vmem>>, vector<9x36xbf16>
    %cst_32 = arith.constant dense<0.000000e+00> : vector<9x33xf32>
    %40 = tpu.matmul %39, %6, %cst_32 {dimension_numbers = #tpu.dot_dimension_numbers<[1], [0], [0], [1], [0, 0, 1, 1], [], []>} : vector<9x36xbf16>, vector<36x33xbf16>, vector<9x33xf32> -> vector<9x33xf32>
    %41 = arith.truncf %40 : vector<9x33xf32> to vector<9x33xbf16>
    %c0_33 = arith.constant 0 : index
    %c264 = arith.constant 264 : index
    %42 = vector.load %arg8[%c0_33, %c264] : memref<9x297xbf16, #tpu.memory_space<vmem>>, vector<9x33xbf16>
    tpu.vector_store %arg8[%c0_33, %c264], %41 {strides = array<i32>} : memref<9x297xbf16, #tpu.memory_space<vmem>>, vector<9x33xbf16>,
    %c0_34 = arith.constant 0 : index
    %c0_35 = arith.constant 0 : index
    %43 = vector.load %arg8[%c0_34, %c0_35] : memref<9x297xbf16, #tpu.memory_space<vmem>>, vector<9x297xbf16>
    %c0_36 = arith.constant 0 : index
    %c0_37 = arith.constant 0 : index
    %44 = vector.load %arg4[%c0_36, %c0_37] : memref<297x33xbf16, #tpu.memory_space<vmem>>, vector<297x33xbf16>
    %cst_38 = arith.constant dense<0.000000e+00> : vector<9x33xf32>
    %45 = tpu.matmul %43, %44, %cst_38 {dimension_numbers = #tpu.dot_dimension_numbers<[1], [0], [0], [1], [0, 0, 1, 1], [], []>} : vector<9x297xbf16>, vector<297x33xbf16>, vector<9x33xf32> -> vector<9x33xf32>
    %cst_39 = arith.constant 0.000000e+00 : f32
    %46 = vector.broadcast %cst_39 : f32 to vector<9x33xf32>
    %47 = arith.maximumf %45, %46 : vector<9x33xf32>
    %48 = arith.truncf %47 : vector<9x33xf32> to vector<9x33xbf16>
    %c0_40 = arith.constant 0 : index
    %c0_41 = arith.constant 0 : index
    %49 = vector.load %arg5[%c0_40, %c0_41] : memref<36x9xbf16, #tpu.memory_space<vmem>>, vector<4x9xbf16>
    %cst_42 = arith.constant dense<0.000000e+00> : vector<4x33xf32>
    %50 = tpu.matmul %49, %48, %cst_42 {dimension_numbers = #tpu.dot_dimension_numbers<[1], [0], [0], [1], [0, 0, 1, 1], [], []>} : vector<4x9xbf16>, vector<9x33xbf16>, vector<4x33xf32> -> vector<4x33xf32>
    %51 = arith.truncf %50 : vector<4x33xf32> to vector<4x33xbf16>
    %c0_43 = arith.constant 0 : index
    %c0_44 = arith.constant 0 : index
    %52 = vector.load %arg9[%c0_43, %c0_44] : memref<4x297xbf16, #tpu.memory_space<vmem>>, vector<4x33xbf16>
    tpu.vector_store %arg9[%c0_43, %c0_44], %51 {strides = array<i32>} : memref<4x297xbf16, #tpu.memory_space<vmem>>, vector<4x33xbf16>,
    %c4 = arith.constant 4 : index
    %c0_45 = arith.constant 0 : index
    %53 = vector.load %arg5[%c4, %c0_45] : memref<36x9xbf16, #tpu.memory_space<vmem>>, vector<4x9xbf16>
    %cst_46 = arith.constant dense<0.000000e+00> : vector<4x33xf32>
    %54 = tpu.matmul %53, %48, %cst_46 {dimension_numbers = #tpu.dot_dimension_numbers<[1], [0], [0], [1], [0, 0, 1, 1], [], []>} : vector<4x9xbf16>, vector<9x33xbf16>, vector<4x33xf32> -> vector<4x33xf32>
    %55 = arith.truncf %54 : vector<4x33xf32> to vector<4x33xbf16>
    %c0_47 = arith.constant 0 : index
    %c33_48 = arith.constant 33 : index
    %56 = vector.load %arg9[%c0_47, %c33_48] : memref<4x297xbf16, #tpu.memory_space<vmem>>, vector<4x33xbf16>
    tpu.vector_store %arg9[%c0_47, %c33_48], %55 {strides = array<i32>} : memref<4x297xbf16, #tpu.memory_space<vmem>>, vector<4x33xbf16>,
    %c8 = arith.constant 8 : index
    %c0_49 = arith.constant 0 : index
    %57 = vector.load %arg5[%c8, %c0_49] : memref<36x9xbf16, #tpu.memory_space<vmem>>, vector<4x9xbf16>
    %cst_50 = arith.constant dense<0.000000e+00> : vector<4x33xf32>
    %58 = tpu.matmul %57, %48, %cst_50 {dimension_numbers = #tpu.dot_dimension_numbers<[1], [0], [0], [1], [0, 0, 1, 1], [], []>} : vector<4x9xbf16>, vector<9x33xbf16>, vector<4x33xf32> -> vector<4x33xf32>
    %59 = arith.truncf %58 : vector<4x33xf32> to vector<4x33xbf16>
    %c0_51 = arith.constant 0 : index
    %c66_52 = arith.constant 66 : index
    %60 = vector.load %arg9[%c0_51, %c66_52] : memref<4x297xbf16, #tpu.memory_space<vmem>>, vector<4x33xbf16>
    tpu.vector_store %arg9[%c0_51, %c66_52], %59 {strides = array<i32>} : memref<4x297xbf16, #tpu.memory_space<vmem>>, vector<4x33xbf16>,
    %c12 = arith.constant 12 : index
    %c0_53 = arith.constant 0 : index
    %61 = vector.load %arg5[%c12, %c0_53] : memref<36x9xbf16, #tpu.memory_space<vmem>>, vector<4x9xbf16>
    %cst_54 = arith.constant dense<0.000000e+00> : vector<4x33xf32>
    %62 = tpu.matmul %61, %48, %cst_54 {dimension_numbers = #tpu.dot_dimension_numbers<[1], [0], [0], [1], [0, 0, 1, 1], [], []>} : vector<4x9xbf16>, vector<9x33xbf16>, vector<4x33xf32> -> vector<4x33xf32>
    %63 = arith.truncf %62 : vector<4x33xf32> to vector<4x33xbf16>
    %c0_55 = arith.constant 0 : index
    %c99_56 = arith.constant 99 : index
    %64 = vector.load %arg9[%c0_55, %c99_56] : memref<4x297xbf16, #tpu.memory_space<vmem>>, vector<4x33xbf16>
    tpu.vector_store %arg9[%c0_55, %c99_56], %63 {strides = array<i32>} : memref<4x297xbf16, #tpu.memory_space<vmem>>, vector<4x33xbf16>,
    %c16 = arith.constant 16 : index
    %c0_57 = arith.constant 0 : index
    %65 = vector.load %arg5[%c16, %c0_57] : memref<36x9xbf16, #tpu.memory_space<vmem>>, vector<4x9xbf16>
    %cst_58 = arith.constant dense<0.000000e+00> : vector<4x33xf32>
    %66 = tpu.matmul %65, %48, %cst_58 {dimension_numbers = #tpu.dot_dimension_numbers<[1], [0], [0], [1], [0, 0, 1, 1], [], []>} : vector<4x9xbf16>, vector<9x33xbf16>, vector<4x33xf32> -> vector<4x33xf32>
    %67 = arith.truncf %66 : vector<4x33xf32> to vector<4x33xbf16>
    %c0_59 = arith.constant 0 : index
    %c132_60 = arith.constant 132 : index
    %68 = vector.load %arg9[%c0_59, %c132_60] : memref<4x297xbf16, #tpu.memory_space<vmem>>, vector<4x33xbf16>
    tpu.vector_store %arg9[%c0_59, %c132_60], %67 {strides = array<i32>} : memref<4x297xbf16, #tpu.memory_space<vmem>>, vector<4x33xbf16>,
    %c20 = arith.constant 20 : index
    %c0_61 = arith.constant 0 : index
    %69 = vector.load %arg5[%c20, %c0_61] : memref<36x9xbf16, #tpu.memory_space<vmem>>, vector<4x9xbf16>
    %cst_62 = arith.constant dense<0.000000e+00> : vector<4x33xf32>
    %70 = tpu.matmul %69, %48, %cst_62 {dimension_numbers = #tpu.dot_dimension_numbers<[1], [0], [0], [1], [0, 0, 1, 1], [], []>} : vector<4x9xbf16>, vector<9x33xbf16>, vector<4x33xf32> -> vector<4x33xf32>
    %71 = arith.truncf %70 : vector<4x33xf32> to vector<4x33xbf16>
    %c0_63 = arith.constant 0 : index
    %c165_64 = arith.constant 165 : index
    %72 = vector.load %arg9[%c0_63, %c165_64] : memref<4x297xbf16, #tpu.memory_space<vmem>>, vector<4x33xbf16>
    tpu.vector_store %arg9[%c0_63, %c165_64], %71 {strides = array<i32>} : memref<4x297xbf16, #tpu.memory_space<vmem>>, vector<4x33xbf16>,
    %c24 = arith.constant 24 : index
    %c0_65 = arith.constant 0 : index
    %73 = vector.load %arg5[%c24, %c0_65] : memref<36x9xbf16, #tpu.memory_space<vmem>>, vector<4x9xbf16>
    %cst_66 = arith.constant dense<0.000000e+00> : vector<4x33xf32>
    %74 = tpu.matmul %73, %48, %cst_66 {dimension_numbers = #tpu.dot_dimension_numbers<[1], [0], [0], [1], [0, 0, 1, 1], [], []>} : vector<4x9xbf16>, vector<9x33xbf16>, vector<4x33xf32> -> vector<4x33xf32>
    %75 = arith.truncf %74 : vector<4x33xf32> to vector<4x33xbf16>
    %c0_67 = arith.constant 0 : index
    %c198_68 = arith.constant 198 : index
    %76 = vector.load %arg9[%c0_67, %c198_68] : memref<4x297xbf16, #tpu.memory_space<vmem>>, vector<4x33xbf16>
    tpu.vector_store %arg9[%c0_67, %c198_68], %75 {strides = array<i32>} : memref<4x297xbf16, #tpu.memory_space<vmem>>, vector<4x33xbf16>,
    %c28 = arith.constant 28 : index
    %c0_69 = arith.constant 0 : index
    %77 = vector.load %arg5[%c28, %c0_69] : memref<36x9xbf16, #tpu.memory_space<vmem>>, vector<4x9xbf16>
    %cst_70 = arith.constant dense<0.000000e+00> : vector<4x33xf32>
    %78 = tpu.matmul %77, %48, %cst_70 {dimension_numbers = #tpu.dot_dimension_numbers<[1], [0], [0], [1], [0, 0, 1, 1], [], []>} : vector<4x9xbf16>, vector<9x33xbf16>, vector<4x33xf32> -> vector<4x33xf32>
    %79 = arith.truncf %78 : vector<4x33xf32> to vector<4x33xbf16>
    %c0_71 = arith.constant 0 : index
    %c231_72 = arith.constant 231 : index
    %80 = vector.load %arg9[%c0_71, %c231_72] : memref<4x297xbf16, #tpu.memory_space<vmem>>, vector<4x33xbf16>
    tpu.vector_store %arg9[%c0_71, %c231_72], %79 {strides = array<i32>} : memref<4x297xbf16, #tpu.memory_space<vmem>>, vector<4x33xbf16>,
    %c32 = arith.constant 32 : index
    %c0_73 = arith.constant 0 : index
    %81 = vector.load %arg5[%c32, %c0_73] : memref<36x9xbf16, #tpu.memory_space<vmem>>, vector<4x9xbf16>
    %cst_74 = arith.constant dense<0.000000e+00> : vector<4x33xf32>
    %82 = tpu.matmul %81, %48, %cst_74 {dimension_numbers = #tpu.dot_dimension_numbers<[1], [0], [0], [1], [0, 0, 1, 1], [], []>} : vector<4x9xbf16>, vector<9x33xbf16>, vector<4x33xf32> -> vector<4x33xf32>
    %83 = arith.truncf %82 : vector<4x33xf32> to vector<4x33xbf16>
    %c0_75 = arith.constant 0 : index
    %c264_76 = arith.constant 264 : index
    %84 = vector.load %arg9[%c0_75, %c264_76] : memref<4x297xbf16, #tpu.memory_space<vmem>>, vector<4x33xbf16>
    tpu.vector_store %arg9[%c0_75, %c264_76], %83 {strides = array<i32>} : memref<4x297xbf16, #tpu.memory_space<vmem>>, vector<4x33xbf16>,
    %c0_77 = arith.constant 0 : index
    %c0_78 = arith.constant 0 : index
    %85 = vector.load %arg9[%c0_77, %c0_78] : memref<4x297xbf16, #tpu.memory_space<vmem>>, vector<4x297xbf16>
    %c0_79 = arith.constant 0 : index
    %c0_80 = arith.constant 0 : index
    %86 = vector.load %arg6[%c0_79, %c0_80] : memref<297x128xbf16, #tpu.memory_space<vmem>>, vector<297x128xbf16>
    %cst_81 = arith.constant dense<0.000000e+00> : vector<4x128xf32>
    %87 = tpu.matmul %85, %86, %cst_81 {dimension_numbers = #tpu.dot_dimension_numbers<[1], [0], [0], [1], [0, 0, 1, 1], [], []>} : vector<4x297xbf16>, vector<297x128xbf16>, vector<4x128xf32> -> vector<4x128xf32>
    %cst_82 = arith.constant 0.000000e+00 : f32
    %88 = vector.broadcast %cst_82 : f32 to vector<4x128xf32>
    %89 = arith.maximumf %87, %88 : vector<4x128xf32>
    %cst_83 = arith.constant dense<0.000000e+00> : vector<128xf32>
    %90 = vector.multi_reduction <add>, %89, %cst_83 [0] : vector<4x128xf32> to vector<128xf32>
    %91 = vector.shape_cast %90 : vector<128xf32> to vector<1x128xf32>
    %cst_84 = arith.constant 4.000000e+00 : f32
    %92 = vector.broadcast %cst_84 : f32 to vector<1x128xf32>
    %93 = arith.divf %91, %92 : vector<1x128xf32>
    %c0_85 = arith.constant 0 : index
    %c0_86 = arith.constant 0 : index
    %c0_87 = arith.constant 0 : index
    %94 = vector.load %arg7[%c0_85, %c0_86, %c0_87] : memref<1x1x128xf32, #tpu.memory_space<vmem>>, vector<1x1x128xf32>
    %95 = vector.shape_cast %94 : vector<1x1x128xf32> to vector<1x128xf32>
    %96 = vector.shape_cast %93 : vector<1x128xf32> to vector<1x1x128xf32>
    tpu.vector_store %arg7[%c0_85, %c0_86, %c0_87], %96 {strides = array<i32>} : memref<1x1x128xf32, #tpu.memory_space<vmem>>, vector<1x1x128xf32>,
    return
  }
  func.func @transform_0(%arg0: i32) -> (i32, i32, i32) {
    %c0_i32 = arith.constant 0 : i32
    %c0_i32_0 = arith.constant 0 : i32
    %c0_i32_1 = arith.constant 0 : i32
    return %arg0, %c0_i32, %c0_i32_0 : i32, i32, i32
  }
  func.func @transform_1(%arg0: i32) -> (i32, i32) {
    %c0_i32 = arith.constant 0 : i32
    %c0_i32_0 = arith.constant 0 : i32
    %c0_i32_1 = arith.constant 0 : i32
    return %c0_i32, %c0_i32_0 : i32, i32
  }
  func.func @transform_2(%arg0: i32) -> (i32, i32) {
    %c0_i32 = arith.constant 0 : i32
    %c0_i32_0 = arith.constant 0 : i32
    %c0_i32_1 = arith.constant 0 : i32
    return %c0_i32, %c0_i32_0 : i32, i32
  }
  func.func @transform_3(%arg0: i32) -> (i32, i32) {
    %c0_i32 = arith.constant 0 : i32
    %c0_i32_0 = arith.constant 0 : i32
    %c0_i32_1 = arith.constant 0 : i32
    return %c0_i32, %c0_i32_0 : i32, i32
  }
  func.func @transform_4(%arg0: i32) -> (i32, i32) {
    %c0_i32 = arith.constant 0 : i32
    %c0_i32_0 = arith.constant 0 : i32
    %c0_i32_1 = arith.constant 0 : i32
    return %c0_i32, %c0_i32_0 : i32, i32
  }
  func.func @transform_5(%arg0: i32) -> (i32, i32) {
    %c0_i32 = arith.constant 0 : i32
    %c0_i32_0 = arith.constant 0 : i32
    %c0_i32_1 = arith.constant 0 : i32
    return %c0_i32, %c0_i32_0 : i32, i32
  }
  func.func @transform_6(%arg0: i32) -> (i32, i32, i32) {
    %c0_i32 = arith.constant 0 : i32
    %c0_i32_0 = arith.constant 0 : i32
    %c0_i32_1 = arith.constant 0 : i32
    return %arg0, %c0_i32, %c0_i32_0 : i32, i32, i32
  }
}

</mosaic_0001>

<bundles_post_ra>
// kernel: condition_forward.1
= control target key start
LH: loop header
LB: loop body
LE: loop exit
PB: predicated region body
PF: predicated region fallthrough
CT: control target
= control target key end

     0   :  { %11 = vsyncpa [#allocation5], 0  ;;  %s2575_s0 = inlined_call_operand.vmem [shape: bf16[2,36,160], index: 0, kind: input, shape index: {}]   ;;  %s2576_s1 = inlined_call_operand.vmem [shape: bf16[160,33], index: 1, kind: input, shape index: {}]   ;;  %s2577_s2 = inlined_call_operand.vmem [shape: bf16[81,36], index: 2, kind: input, shape index: {}]   ;;  %s2578_s3 = inlined_call_operand.vmem [shape: bf16[297,33], index: 3, kind: input, shape index: {}]   ;;  %s2579_s4 = inlined_call_operand.vmem [shape: bf16[36,9], index: 4, kind: input, shape index: {}]   ;;  %s2580_s5 = inlined_call_operand.vmem [shape: bf16[297,128], index: 5, kind: input, shape index: {}]   ;;  %s2581_s6 = inlined_call_operand.hbm [shape: f32[2,1,128], index: 6, kind: output, shape index: {}]  }
   0x1   :  { %13 = vsyncpa [#allocation5 + $0x1], 0  ;;  %s2150_s21 = smov 0   ;;  %s2152_s22 = smov 0  }
   0x2   :  { %s2154_s23 = smov 0   ;;  %s2156_s24 = smov 0  }
   0x3 LB: > { %s2171_s25 = sadd.s32 4294967295, %s2103_s24   ;;  %s1639_s26 = sadd.s32 4294967294, %s2103_s24   ;;  %s2103_s24 = sphi %s2156_s24, %s2591_s24   ;;  %s2099_s23 = sphi %s2154_s23, %s2590_s23   ;;  %s2095_s22 = sphi %s2152_s22, %s2589_s22   ;;  %s2091_s21 = sphi %s2150_s21, %s2588_s21  }
   0x4   : > { %s2175_s27 = sadd.s32 1, %s2103_s24   ;;  %s157_s28 = sadd.s32 1, %s2099_s23 }
   0x5   : > { %s154_s29 = ssub.s32 %s2103_s24, %s2175_s27  ;;  %p167_p0 = scmp.ne.s32.totalorder %s2099_s23, %s2095_s22 }
   0x6   : > { %p155_p1 = scmp.eq.s32.totalorder %s154_s29, 0  ;;  %p168_p2 = scmp.eq.s32.totalorder %s2171_s25, 1 }
   0x7   : > { %p173_p3 = scmp.ne.s32.totalorder %s2095_s22, %s2091_s21  ;;  %p174_p4 = scmp.eq.s32.totalorder %s1639_s26, 1 }
   0x8   : > { %s2186_s30 = scalar_select %p155_p1, %s2099_s23, %s157_s28  }
   0x9   : > { %p2188_p5 = por %p168_p2, %p167_p0  ;;  %p2192_p6 = por %p174_p4, %p173_p3 }
   0xa   : > { %p1642_p7 = scmp.ge.s32.totalorder %s2103_s24, 1  ;;  %p215_p8 = scmp.lt.s32.totalorder %s2103_s24, 3 }
   0xc   : > { %p216_p9 = pnand %p1642_p7, %p215_p8 }
   0xd   : > { %p244_p10 = scmp.lt.s32.totalorder (!%p216_p9), %s2171_s25, 1  ;;  %s2105_s10 = smov (!%p216_p9), 33  }
   0xe   : > { %219 = sbr.rel (%p216_p9) target bundleno = 1168 (0x490), region = 44  ;;  %s2106_s11 = smov (!%p216_p9), 66  }
   0xf   : > { %s2107_s12 = smov (!%p216_p9), 99   ;;  %s2108_s13 = smov (!%p216_p9), 4  }
  0x10   : > { %s2109_s14 = smov (!%p216_p9), 37   ;;  %s2582_s16 = smov (!%p216_p9), 70  }
  0x11   : > { %s2112_s17 = smov (!%p216_p9), 8   ;;  %s1580_s19 = scalar_lea.hbm (!%p216_p9), %s2581_s6, %s2171_s25 }
  0x12   : > { %s2061_s20 = scalar_lea.hbm (!%p216_p9), %s2581_s6, 2 }
  0x13   : > { %v1936_v0 = vld [vmem:[%s2576_s1 + $0x38] sm:$0xff]  ;;  %v1938_v1 = vld [vmem:[%s2576_s1 + $0x48] sm:$0xff]  ;;  %v1935_v2 = vld [vmem:[%s2576_s1 + $0x30] sm:$0xff]  ;;  %s245_s15 = scalar_select %p244_p10, %s2171_s25, 1  ;;  %vm359_vm0 = vcmask 261120   ;;  %vm434_vm1 = vcmask 1041408  }
  0x14   : > { %369 = vmatpush.bf16.msra.mxu0 %v1936_v0  ;;  %398 = vmatpush.bf16.msra.mxu1 %v1938_v1  ;;  %v1937_v3 = vld [vmem:[%s2576_s1 + $0x40] sm:$0xff]  ;;  %v1934_v4 = vld [vmem:[%s2576_s1 + $0x28] sm:$0xff]  ;;  %v1932_v9 = vld [vmem:[%s2576_s1 + $0x18] sm:$0xff]  ;;  %vm430_vm2 = vcmask 293888   ;;  %vm454_vm3 = vcmask 265216   ;;  %vm456_vm4 = vcmask 262144  }
  0x15   : > { %s1989_s18 = smul.u32 40, %s245_s15  ;;  %v1933_v8 = vld [vmem:[%s2576_s1 + $0x20] sm:$0xff]  ;;  %v1931_v10 = vld [vmem:[%s2576_s1 + $0x10] sm:$0xff]  ;;  %v1930_v13 = vld [vmem:[%s2576_s1 + $0x8] sm:$0xff]  ;;  %vm457_vm5 = vsmask.f32 256 }
  0x16   : > { %v1929_v15 = vld [vmem:[%s2576_s1] sm:$0xff]  ;;  %v1940_v39 = vld [vmem:[%s2577_s2 + $0x4] sm:$0x10]  ;;  %v1715_v53 = vld [vmem:[%s2577_s2 + $0x8] sm:$0xe]  ;;  %s2110_s15 = smov 103  }
  0x17   : > { %s248_s29 = scalar_lea.vmem %s2575_s0, %s1989_s18  ;;  %v1710_v38 = vld [vmem:[%s2577_s2 + $0x4] sm:$0xf]  ;;  %v1941_v54 = vld [vmem:[%s2577_s2 + $0x8] sm:$0x30]  ;;  %v1705_v61 = vld [vmem:[%s2577_s2] sm:$0xf] }
  0x18   : > { %370 = vmatpush.bf16.msra.mxu0 %v1935_v2  ;;  %399 = vmatpush.bf16.msra.mxu1 %v1937_v3  ;;  %v1925_v5 = vld [vmem:[%s248_s29 + $0x4] sm:$0xf]  ;;  %v1648_v6 = vld [vmem:[%s248_s29 + $0x8] sm:$0xf0]  ;;  %v1927_v11 = vld [vmem:[%s248_s29 + $0x14] sm:$0xf]  ;;  %v1711_v43 = vor.u32 %v1940_v39, %v1710_v38  ;;  %v1716_v60 = vor.u32 %v1941_v54, %v1715_v53 }
  0x19   : > { %v1651_v7 = vor.u32 %v1925_v5, %v1648_v6  ;;  %v1656_v12 = vld [vmem:[%s248_s29 + $0x18] sm:$0xf0]  ;;  %v1646_v16 = vld [vmem:[%s248_s29] sm:$0xf]  ;;  %v1926_v17 = vld [vmem:[%s248_s29 + $0x4] sm:$0xf0] }
  0x1a   : > { %v1659_v14 = vor.u32 %v1927_v11, %v1656_v12  ;;  %v1647_v18 = vor.u32 %v1926_v17, %v1646_v16  ;;  %v254_v19 = vld [vmem:[%s248_s29 + $0x20] sm:$0x33]  ;;  %v1654_v22 = vld [vmem:[%s248_s29 + $0x10] sm:$0xf]  ;;  %v1928_v23 = vld [vmem:[%s248_s29 + $0x14] sm:$0xf0] }
  0x1b   : > { %1700 = vmatmul.msk.bf16.vlgmr.msra.gmra.mxu1 %vm359_vm0, %v1651_v7  ;;  %v289_v20 = vunpack.c.h.b16 %v254_v19  ;;  %v1655_v24 = vor.u32 %v1928_v23, %v1654_v22  ;;  %v288_v25 = vunpack.c.l.b16 %v254_v19  ;;  %v472_v49 = vshll.u32 %v1711_v43, 16  ;;  %v1939_v62 = vld [vmem:[%s2577_s2] sm:$0x10]  ;;  %v1720_v3 = vld [vmem:[%s2577_s2 + $0xc] sm:$0xe]  ;;  %vm458_vm6 = vmand %vm456_vm4, %vm457_vm5  ;;  %s242_s29 = sand.u32 1, %s2095_s22  }
  0x1c   : > { %371 = vmatpush.bf16.msra.mxu0 %v1934_v4  ;;  %v470_v57 = vshrl.u32 %v1711_v43, 16  ;;  %v1706_v1 = vor.u32 %v1939_v62, %v1705_v61  ;;  %v517_v2 = vrot.slane %v1716_v60, 1  ;;  %v1942_v4 = vld [vmem:[%s2577_s2 + $0xc] sm:$0x30]  ;;  %v1945_v11 = vld [vmem:[%s2577_s2 + $0x18] sm:$0xf0] }
  0x1d   : > { %v295_v21 = vpack.c.b16 %v289_v20, %v289_v20  ;;  %v294_v26 = vpack.c.b16 %v288_v25, %v288_v25  ;;  %v474_v58 = vrot.slane %v472_v49, 1  ;;  %v1721_v5 = vor.u32 %v1942_v4, %v1720_v3  ;;  %v1944_v19 = vld [vmem:[%s2577_s2 + $0x14] sm:$0x70]  ;;  %v1740_v20 = vld [vmem:[%s2577_s2 + $0x1c] sm:$0x8] }
  0x1e   : > { %v459_v43 = vld [vmem:[#allocation2 + $0xc] sm:$0x1]  ;;  %vm505_vm7 = vcmask 532744   ;;  %vm547_vm9 = vcmask 803344   ;;  %vm603_vm11 = vcmask 1041176   ;;  %vm605_vm12 = vcmask 28676  }
  0x1f   : > { %v475_v0 = vor.u32 %v474_v58, %v470_v57  ;;  %v560_v6 = vshrl.u32 %v1721_v5, 16  ;;  %v563_v7 = vshll.u32 %v1721_v5, 16  ;;  %vm506_vm8 = vmand %vm505_vm7, %vm457_vm5  ;;  %vm606_vm13 = vsmask.f32 4352 }
  0x20   : > { %372 = vmatpush.bf16.msra.mxu0 %v1933_v8  ;;  %v1725_v8 = vld [vmem:[%s2577_s2 + $0x10] sm:$0xc]  ;;  %vm548_vm10 = vmand %vm547_vm9, %vm457_vm5  ;;  %vm649_vm4 = vcmask 294944   ;;  %vm2583_vm9 = vcmask 1043456  }
  0x21   : > { %v562_v12 = vrot.slane %v560_v6, 1  ;;  %vm604_vm14 = vmand %vm603_vm11, %vm457_vm5  ;;  %vm1020_vm11 = vcmask 1044480  }
  0x22   : > { %vm607_vm15 = vmand %vm605_vm12, %vm606_vm13  ;;  %vm698_vm12 = vcmask 565544  }
  0x23   : > { %vm650_vm7 = vmand %vm649_vm4, %vm457_vm5  ;;  %vm740_vm4 = vcmask 836144  }
  0x24   : > { %373 = vmatpush.bf16.msra.mxu0 %v1932_v9  ;;  %v1943_v9 = vld [vmem:[%s2577_s2 + $0x10] sm:$0x70] }
  0x28   : > { %374 = vmatpush.bf16.msra.mxu0 %v1931_v10  ;;  %v1735_v10 = vld [vmem:[%s2577_s2 + $0x18] sm:$0x8] }
  0x2b   : > { %1701 = vmatmul.msk.bf16.gmra.mxu1 %vm359_vm0, %v1659_v14  ;;  %v1726_v14 = vor.u32 %v1943_v9, %v1725_v8 }
  0x2c   : > { %375 = vmatpush.bf16.msra.mxu0 %v1930_v13  ;;  %v565_v13 = vrot.slane %v563_v7, 2 }
  0x2d   : > { %v619_v17 = vrot.slane %v1726_v14, 2  ;;  %v1956_v14 = vld [vmem:[%s2578_s3 + $0x28] sm:$0xff] }
  0x2e   : > { %v566_v16 = vor.u32 %v565_v13, %v562_v12  ;;  %v1958_v12 = vld [vmem:[%s2578_s3 + $0x38] sm:$0xff]  ;;  %v1957_v13 = vld [vmem:[%s2578_s3 + $0x30] sm:$0xff] }
  0x30   : > { %376 = vmatpush.bf16.msra.mxu0 %v1929_v15  ;;  %v1736_v15 = vor.u32 %v1945_v11, %v1735_v10 }
  0x32   : > { %v710_v22 = vrot.slane %v1736_v15, 3  ;;  %v1955_v15 = vld [vmem:[%s2578_s3 + $0x20] sm:$0xff] }
  0x33   : > { %377 = vmatmul.bf16.vlgmr.msra.gmra.mxu0 %v1647_v18  ;;  %v1730_v18 = vld [vmem:[%s2577_s2 + $0x14] sm:$0xc] }
  0x34   : > { %v1731_v23 = vor.u32 %v1944_v19, %v1730_v18  ;;  %1026 = vmatpush.bf16.msrb.mxu0 %v1958_v12 }
  0x36   : > { %v662_v25 = vshrl.u32 %v1731_v23, 16 }
  0x38   : > { %1027 = vmatpush.bf16.msrb.mxu0 %v1957_v13 }
  0x3b   : > { %1702 = vmatmul.msk.bf16.gmra.mxu1 %vm359_vm0, %v295_v21  ;;  %v1946_v21 = vld [vmem:[%s2577_s2 + $0x1c] sm:$0xf0]  ;;  %vm594_vm0 = vcmask 809984  }
  0x3c   : > { %1028 = vmatpush.bf16.msrb.mxu0 %v1956_v14 }
  0x40   : > { %1029 = vmatpush.bf16.msrb.mxu0 %v1955_v15 }
  0x43   : > { %382 = vmatmul.bf16.gmra.mxu0 %v1655_v24  ;;  %v1741_v24 = vor.u32 %v1946_v21, %v1740_v20  ;;  %v1953_v20 = vld [vmem:[%s2578_s3 + $0x10] sm:$0xff]  ;;  %v1966_v21 = vld [vmem:[%s2578_s3 + $0x78] sm:$0xff] }
  0x53   : > { %387 = vmatmul.bf16.gmra.mxu0 %v294_v26  ;;  %v665_v26 = vshll.u32 %v1731_v23, 16 }
  0x98   : > { %v401_v27 = vpop.f32.mrf.mxu1 }
  0xa0   : > { %v403_v28 = vpop.f32.mrf.mxu1 }
  0xa8   : > { %v406_v29 = vpop.f32.mrf.mxu1 }
  0xb0   : > { %v378_v30 = vpop.f32.mrf.mxu0  ;;  %v408_v31 = vpop.f32.mrf.mxu1 }
  0xb1   : > { %v402_v50 = vadd.f32 %v401_v27, %v378_v30  ;;  %v753_v27 = vshrl.u32 %v1741_v24, 16  ;;  %v667_v30 = vrot.slane %v665_v26, 3 }
  0xb3   : > { %v415_v59 = vmax.f32 %v402_v50, 0.0 }
  0xb8   : > { %v380_v32 = vpop.f32.mrf.mxu0  ;;  %v411_v33 = vpop.f32.mrf.mxu1 }
  0xb9   : > { %v404_v46 = vadd.f32 %v403_v28, %v380_v32  ;;  %v756_v28 = vshll.u32 %v1741_v24, 16  ;;  %v1965_v24 = vld [vmem:[%s2578_s3 + $0x70] sm:$0xff] }
  0xbb   : > { %v416_v55 = vmax.f32 %v404_v46, 0.0  ;;  %v758_v32 = vrot.slane %v756_v28, 4  ;;  %v1951_v28 = vld [vmem:[%s2578_s3] sm:$0xff] }
  0xbd   : > { %v420_v63 = vpack.c.bf16 %v416_v55, %v415_v59 }
  0xc0   : > { %v383_v34 = vpop.f32.mrf.mxu0  ;;  %v413_v35 = vpop.f32.mrf.mxu1 }
  0xc1   : > { %v407_v44 = vadd.f32 %v406_v29, %v383_v34  ;;  %v664_v29 = vrot.slane %v662_v25, 2  ;;  %v1745_v35 = vld [vmem:[%s2577_s2 + $0x24] sm:$0xf] }
  0xc3   : > { %v417_v51 = vmax.f32 %v407_v44, 0.0 }
  0xc8   : > { %v385_v36 = vpop.f32.mrf.mxu0 }
  0xc9   : > { %v409_v41 = vadd.f32 %v408_v31, %v385_v36  ;;  %v755_v31 = vrot.slane %v753_v27, 3  ;;  %v1947_v36 = vld [vmem:[%s2577_s2 + $0x24] sm:$0x10] }
  0xcb   : > { %v418_v47 = vmax.f32 %v409_v41, 0.0  ;;  %v759_v34 = vor.u32 %v758_v32, %v755_v31 }
  0xcd   : > { %v2254_v56 = vpack.c.bf16 %v418_v47, %v417_v51 }
  0xd0   : > { %v388_v37 = vpop.f32.mrf.mxu0 }
  0xd1   : > { %v412_v40 = vadd.f32 %v411_v33, %v388_v37  ;;  %v668_v33 = vor.u32 %v667_v30, %v664_v29  ;;  %v1746_v37 = vor.u32 %v1947_v36, %v1745_v35  ;;  %v1964_v29 = vld [vmem:[%s2578_s3 + $0x68] sm:$0xff]  ;;  %v1963_v30 = vld [vmem:[%s2578_s3 + $0x60] sm:$0xff]  ;;  %v1962_v36 = vld [vmem:[%s2578_s3 + $0x58] sm:$0xff] }
  0xd3   : > { %v419_v42 = vmax.f32 %v412_v40, 0.0 }
  0xd5   : > { %v422_v45 = vpack.c.bf16 %v419_v42, %v419_v42 }
  0xd7   : > { %v2243_v48 = vsel %vm434_vm1, %v422_v45, 0 }
  0xd8   : > { %v390_v52 = vpop.f32.mrf.mxu0  ;;  %443 = vmatpush.bf16.msrb.mxu1 %v2243_v48  ;;  %484 = vmatpush.bf16.msra.mxu3 %v2243_v48 }
  0xd9   : > { %526 = vmatpush.bf16.msra.mxu2 %v2243_v48 }
  0xdc   : > { %444 = vmatpush.bf16.msrb.mxu1 %v2254_v56  ;;  %485 = vmatpush.bf16.msra.mxu3 %v2254_v56 }
  0xdd   : > { %527 = vmatpush.bf16.msra.mxu2 %v2254_v56 }
  0xe0   : > { %445 = vmatpush.bf16.msrb.mxu1 %v420_v63  ;;  %486 = vmatpush.bf16.msra.mxu3 %v420_v63 }
  0xe1   : > { %528 = vmatpush.bf16.msra.mxu2 %v420_v63 }
  0xe3   : > { %1712 = vmatmul.msk.bf16.vlgmr.msra.gmra.mxu3 %vm430_vm2, %v475_v0  ;;  %1707 = vmatmul.msk.bf16.vlgmr.msrb.gmra.mxu1 %vm430_vm2, %v1706_v1 }
  0xe4   : > { %575 = vmatpush.bf16.msrb.mxu3 %v2243_v48  ;;  %719 = vmatpush.bf16.msra.mxu1 %v2243_v48 }
  0xe5   : > { %628 = vmatpush.bf16.msrb.mxu2 %v2243_v48 }
  0xe6   : > { %1717 = vmatmul.msk.bf16.vlgmr.msra.gmra.mxu2 %vm430_vm2, %v517_v2 }
  0xe8   : > { %576 = vmatpush.bf16.msrb.mxu3 %v2254_v56  ;;  %720 = vmatpush.bf16.msra.mxu1 %v2254_v56 }
  0xe9   : > { %629 = vmatpush.bf16.msrb.mxu2 %v2254_v56 }
  0xec   : > { %577 = vmatpush.bf16.msrb.mxu3 %v420_v63  ;;  %721 = vmatpush.bf16.msra.mxu1 %v420_v63 }
  0xed   : > { %630 = vmatpush.bf16.msrb.mxu2 %v420_v63 }
  0xf0   : > { %677 = vmatpush.bf16.msra.mxu3 %v2243_v48  ;;  %1040 = vmatpush.bf16.msrb.mxu1 %v1966_v21 }
  0xf1   : > { %768 = vmatpush.bf16.msra.mxu2 %v2243_v48 }
  0xf3   : > { %1722 = vmatmul.msk.bf16.vlgmr.msrb.gmra.mxu3 %vm430_vm2, %v566_v16  ;;  %1737 = vmatmul.msk.bf16.vlgmr.msra.gmra.mxu1 %vm430_vm2, %v710_v22  ;;  %v1954_v16 = vld [vmem:[%s2578_s3 + $0x18] sm:$0xff]  ;;  %v1952_v22 = vld [vmem:[%s2578_s3 + $0x8] sm:$0xff] }
  0xf4   : > { %678 = vmatpush.bf16.msra.mxu3 %v2254_v56  ;;  %1030 = vmatpush.bf16.msrb.mxu0 %v1954_v16 }
  0xf5   : > { %769 = vmatpush.bf16.msra.mxu2 %v2254_v56  ;;  %1041 = vmatpush.bf16.msrb.mxu1 %v1965_v24 }
  0xf6   : > { %1727 = vmatmul.msk.bf16.vlgmr.msrb.gmra.mxu2 %vm430_vm2, %v619_v17 }
  0xf8   : > { %679 = vmatpush.bf16.msra.mxu3 %v420_v63  ;;  %1031 = vmatpush.bf16.msrb.mxu0 %v1953_v20 }
  0xf9   : > { %770 = vmatpush.bf16.msra.mxu2 %v420_v63  ;;  %1042 = vmatpush.bf16.msrb.mxu1 %v1964_v29 }
  0xfc   : > { %819 = vmatpush.bf16.msrb.mxu3 %v2243_v48  ;;  %1032 = vmatpush.bf16.msrb.mxu0 %v1952_v22 }
  0xfd   : > { %1043 = vmatpush.bf16.msrb.mxu1 %v1963_v30 }
 0x100   : > { %820 = vmatpush.bf16.msrb.mxu3 %v2254_v56  ;;  %1033 = vmatpush.bf16.msrb.mxu0 %v1951_v28  ;;  %v1095_v28 = vld [vmem:[%s2579_s4] sm:$0xc] }
 0x101   : > { %1044 = vmatpush.bf16.msrb.mxu1 %v1962_v36 }
 0x103   : > { %1732 = vmatmul.msk.bf16.vlgmr.msra.gmra.mxu3 %vm430_vm2, %v668_v33 }
 0x104   : > { %821 = vmatpush.bf16.msrb.mxu3 %v420_v63 }
 0x106   : > { %1742 = vmatmul.msk.bf16.vlgmr.msra.gmra.mxu2 %vm430_vm2, %v759_v34 }
 0x113   : > { %1747 = vmatmul.msk.bf16.vlgmr.msrb.gmra.mxu3 %vm430_vm2, %v1746_v37  ;;  %vm608_vm2 = vmor %vm607_vm15, %vm604_vm14 }
 0x114   : > { %vm699_vm15 = vmand %vm698_vm12, %vm457_vm5  ;;  %vm738_vm12 = vcmask 839216  }
 0x160   : > { %v447_v38 = vpop.f32.mrf.mxu1 }
 0x161   : > { %v452_v39 = vpack.c.bf16 %v447_v38, %v447_v38  ;;  %v1961_v38 = vld [vmem:[%s2578_s3 + $0x50] sm:$0xff] }
 0x162   : > { %1045 = vmatpush.bf16.msrb.mxu1 %v1961_v38 }
 0x163   : > { %455 = vst.msk [vmem:[#allocation2] sm:$0xf] %vm454_vm3, %v452_v39  ;;  %vm503_vm3 = vcmask 535816  }
 0x166   : > { %v488_v40 = vpop.f32.mrf.mxu3 }
 0x167   : > { %v493_v8 = vpack.c.bf16 %v488_v40, %v488_v40 }
 0x168   : > { %v449_v42 = vpop.f32.mrf.mxu1 }
 0x169   : > { %v530_v41 = vpop.f32.mrf.mxu2  ;;  %v453_v44 = vpack.c.bf16 %v449_v42, %v449_v42  ;;  %v1960_v42 = vld [vmem:[%s2578_s3 + $0x48] sm:$0xff] }
 0x16a   : > { %v535_v52 = vpack.c.bf16 %v530_v41, %v530_v41  ;;  %1046 = vmatpush.bf16.msrb.mxu1 %v1960_v42 }
 0x16b   : > { %v460_v45 = vsel %vm458_vm6, %v453_v44, %v459_v43  ;;  %vm545_vm6 = vcmask 806416  }
 0x16c   : > { %461 = vst [vmem:[#allocation2 + $0xc] sm:$0x1] %v460_v45  ;;  %v1834_v45 = vld [vmem:[%s2578_s3 + $0x90] sm:$0xf] }
 0x16e   : > { %v490_v46 = vpop.f32.mrf.mxu3 }
 0x16f   : > { %v494_v47 = vpack.c.bf16 %v490_v46, %v490_v46  ;;  %v1969_v46 = vld [vmem:[%s2578_s3 + $0x90] sm:$0x10] }
 0x170   : > { %v723_v59 = vpop.f32.mrf.mxu1 }
 0x171   : > { %v532_v48 = vpop.f32.mrf.mxu2  ;;  %499 = vrot.lane.b32.xlu0 %v494_v47, %s2105_s10  ;;  %v728_v5 = vpack.c.bf16 %v723_v59, %v723_v59  ;;  %v1835_v47 = vor.u32 %v1969_v46, %v1834_v45  ;;  %v1194_v45 = vld [vmem:[%s2579_s4 + $0x8] sm:$0x3]  ;;  %v1223_v46 = vld [vmem:[%s2579_s4 + $0x8] sm:$0xc] }
 0x172   : > { %v536_v49 = vpack.c.bf16 %v532_v48, %v532_v48  ;;  %v2113_v48 = vmov 65535  }
 0x173   : > { %v507_v18 = vld [vmem:[#allocation2 + $0xc] sm:$0x1] }
 0x176   : > { %v579_v50 = vpop.f32.mrf.mxu3 }
 0x177   : > { %v584_v62 = vpack.c.bf16 %v579_v50, %v579_v50  ;;  %v1959_v50 = vld [vmem:[%s2578_s3 + $0x40] sm:$0xff] }
 0x178   : > { %v725_v1 = vpop.f32.mrf.mxu1  ;;  %1047 = vmatpush.bf16.msrb.mxu1 %v1959_v50 }
 0x179   : > { %v632_v51 = vpop.f32.mrf.mxu2  ;;  %541 = vrot.lane.b32.xlu0 %v536_v49, %s2106_s11  ;;  %v729_v2 = vpack.c.bf16 %v725_v1, %v725_v1  ;;  %v1021_v49 = vsel %vm2583_vm9, 4294967295, %v2113_v48  ;;  %v1225_v48 = vunpack.c.l.b16 %v1223_v46  ;;  %v1973_v46 = vld [vmem:[%s2580_s5 + $0x18] sm:$0xff] }
 0x17a   : > { %v637_v4 = vpack.c.bf16 %v632_v51, %v632_v51  ;;  %v2404_v51 = vsel %vm1020_vm11, %v1021_v49, 0  ;;  %vm796_vm11 = vcmask 1041208  }
 0x17b   : > { %v1226_v50 = vpack.c.b16 %v1225_v48, %v1225_v48  ;;  %v1920_v48 = vld [vmem:[%s2580_s5 + $0x90] sm:$0xf] }
 0x17e   : > { %v581_v53 = vpop.f32.mrf.mxu3 }
 0x17f   : > { %v585_v55 = vpack.c.bf16 %v581_v53, %v581_v53  ;;  %v1024_v53 = vand.u32 %v1835_v47, %v2404_v51  ;;  %v1285_v47 = vld [vmem:[%s2579_s4 + $0xc] sm:$0xc] }
 0x180   : > { %v1287_v49 = vunpack.c.l.b16 %v1285_v47  ;;  %v1981_v47 = vld [vmem:[%s2580_s5 + $0x58] sm:$0xff] }
 0x181   : > { %v634_v54 = vpop.f32.mrf.mxu2  ;;  %539 = vrot.lane.b32.xlu0 %v535_v52, %s2106_s11  ;;  %590 = vrot.lane.b32.xlu1 %v585_v55, %s2107_s12 }
 0x182   : > { %v638_v58 = vpack.c.bf16 %v634_v54, %v634_v54  ;;  %1059 = vmatpush.bf16.msrb.mxu2 %v1024_v53  ;;  %v1227_v53 = vrot.slane %v1226_v50, 2 }
 0x186   : > { %v681_v56 = vpop.f32.mrf.mxu3 }
 0x187   : > { %v686_v3 = vpack.c.bf16 %v681_v56, %v681_v56 }
 0x189   : > { %v772_v57 = vpop.f32.mrf.mxu2  ;;  %643 = vrot.lane.b32.xlu1 %v638_v58, %s2108_s13 }
 0x18a   : > { %v777_v9 = vpack.c.bf16 %v772_v57, %v772_v57  ;;  %v1968_v57 = vld [vmem:[%s2578_s3 + $0x88] sm:$0xff] }
 0x18b   : > { %1060 = vmatpush.bf16.msrb.mxu2 %v1968_v57  ;;  %v1256_v57 = vld [vmem:[%s2579_s4 + $0xc] sm:$0x3] }
 0x18e   : > { %v683_v60 = vpop.f32.mrf.mxu3 }
 0x18f   : > { %v687_v63 = vpack.c.bf16 %v683_v60, %v683_v60  ;;  %v1967_v60 = vld [vmem:[%s2578_s3 + $0x80] sm:$0xff] }
 0x190   : > { %1061 = vmatpush.bf16.msrb.mxu2 %v1967_v60 }
 0x191   : > { %v774_v61 = vpop.f32.mrf.mxu2  ;;  %692 = vrot.lane.b32.xlu2 %v687_v63, %s2109_s14  ;;  %588 = vrot.lane.b32.xlu1 %v584_v62, %s2107_s12 }
 0x192   : > { %v778_v0 = vpack.c.bf16 %v774_v61, %v774_v61 }
 0x194   : > { %783 = vrot.lane.b32.xlu0 %v778_v0, %s2110_s15 }
 0x196   : > { %v823_v6 = vpop.f32.mrf.mxu3 }
 0x197   : > { %v828_v7 = vpack.c.bf16 %v823_v6, %v823_v6 }
 0x199   : > { %641 = vrot.lane.b32.xlu1 %v637_v4, %s2108_s13  ;;  %734 = vrot.lane.b32.xlu2 %v729_v2, %s2582_s16 }
 0x19c   : > { %690 = vrot.lane.b32.xlu0 %v686_v3, %s2109_s14 }
 0x19e   : > { %v825_v10 = vpop.f32.mrf.mxu3 }
 0x19f   : > { %v829_v11 = vpack.c.bf16 %v825_v10, %v825_v10 }
 0x1a1   : > { %732 = vrot.lane.b32.xlu1 %v728_v5, %s2582_s16  ;;  %497 = vrot.lane.b32.xlu2 %v493_v8, %s2105_s10 }
 0x1a4   : > { %832 = vrot.lane.b32.xlu0 %v828_v7, %s2112_s17 }
 0x1a9   : > { %781 = vrot.lane.b32.xlu2 %v777_v9, %s2110_s15 }
 0x1b1   : > { %834 = vrot.lane.b32.xlu2 %v829_v11, %s2112_s17 }
 0x1e3   : > { %v500_v17 = vpop.permute.xlu0 %499 }
 0x1e4   : > { %v508_v19 = vsel %vm506_vm8, %v500_v17, %v507_v18  ;;  %vm599_vm8 = vcmask 1044248  }
 0x1e5   : > { %509 = vst [vmem:[#allocation2 + $0xc] sm:$0x1] %v508_v19 }
 0x1eb   : > { %v542_v23 = vpop.permute.xlu0 %541  ;;  %v2368_v25 = vpop.permute.xlu2 %692 }
 0x1ec   : > { %v549_v26 = vld [vmem:[#allocation2 + $0xc] sm:$0x1] }
 0x1ed   : > { %v550_v27 = vsel %vm548_vm10, %v542_v23, %v549_v26  ;;  %vm600_vm10 = vcmask 31748  }
 0x1ee   : > { %551 = vst [vmem:[#allocation2 + $0xc] sm:$0x1] %v550_v27  ;;  %vm601_vm14 = vmor %vm600_vm10, %vm599_vm8  ;;  %vm793_vm8 = vcmask 64516   ;;  %vm787_vm10 = vcmask 842752  }
 0x1f3   : > { %v591_v31 = vpop.permute.xlu1 %590  ;;  %v2381_v32 = vpop.permute.xlu2 %734 }
 0x1f4   : > { %v593_v33 = vrot.slane %v591_v31, 4  ;;  %v540_v41 = vpop.permute.xlu0 %539 }
 0x1f5   : > { %v609_v34 = vld [vmem:[#allocation2 + $0xc] sm:$0x11] }
 0x1f6   : > { %v596_v35 = vsel %vm594_vm0, %v593_v33, %v591_v31  ;;  %v1157_v31 = vld [vmem:[%s2579_s4 + $0x4] sm:$0xc] }
 0x1f7   : > { %v610_v37 = vsel %vm608_vm2, %v596_v35, %v609_v34  ;;  %vm647_vm2 = vcmask 298016   ;;  %v1097_v34 = vunpack.c.l.b16 %v1095_v28  ;;  %v1159_v35 = vunpack.c.l.b16 %v1157_v31 }
 0x1f8   : > { %611 = vst [vmem:[#allocation2 + $0xc] sm:$0x11] %v610_v37 }
 0x1fb   : > { %v644_v39 = vpop.permute.xlu1 %643  ;;  %v498_v40 = vpop.permute.xlu2 %497 }
 0x1fc   : > { %504 = vst.msk [vmem:[#allocation2] sm:$0xf] %vm503_vm3, %v498_v40  ;;  %vm696_vm3 = vcmask 568616   ;;  %v1160_v40 = vpack.c.b16 %v1159_v35, %v1159_v35 }
 0x1fd   : > { %546 = vst.msk [vmem:[#allocation2] sm:$0xf] %vm545_vm6, %v540_v41  ;;  %vm741_vm6 = vmand %vm740_vm4, %vm457_vm5 }
 0x1ff   : > { %v651_v43 = vld [vmem:[#allocation2 + $0x10] sm:$0x1]  ;;  %v1949_v1 = vld [vmem:[#allocation2 + $0x8] sm:$0x10] }
 0x200   : > { %v652_v44 = vsel %vm650_vm7, %v644_v39, %v651_v43  ;;  %vm792_vm7 = vcmask 1044280   ;;  %v1098_v39 = vpack.c.b16 %v1097_v34, %v1097_v34  ;;  %v1071_v43 = vld [vmem:[%s2579_s4] sm:$0x3] }
 0x201   : > { %653 = vst [vmem:[#allocation2 + $0x10] sm:$0x1] %v652_v44  ;;  %v1161_v44 = vrot.slane %v1160_v40, 2  ;;  %v1976_v40 = vld [vmem:[%s2580_s5 + $0x30] sm:$0xff] }
 0x202   : > { %v1099_v42 = vrot.slane %v1098_v39, 2 }
 0x203   : > { %v589_v52 = vpop.permute.xlu1 %588  ;;  %v782_v63 = vpop.permute.xlu2 %781 }
 0x204   : > { %v592_v54 = vrot.slane %v589_v52, 4  ;;  %v785_v3 = vrot.slane %v782_v63, 4 }
 0x206   : > { %v784_v55 = vpop.permute.xlu0 %783  ;;  %v595_v56 = vsel %vm594_vm0, %v592_v54, %v589_v52  ;;  %v788_v7 = vsel %vm787_vm10, %v785_v3, %v782_v63  ;;  %v1288_v52 = vpack.c.b16 %v1287_v49, %v1287_v49  ;;  %v1128_v54 = vld [vmem:[%s2579_s4 + $0x4] sm:$0x3]  ;;  %v1988_v49 = vld [vmem:[%s2580_s5 + $0x90] sm:$0x10] }
 0x207   : > { %602 = vst.msk [vmem:[#allocation2] sm:$0xff] %vm601_vm14, %v595_v56  ;;  %vm798_vm14 = vcmask 61444   ;;  %v786_v9 = vrot.slane %v784_v55, 4  ;;  %v1322_v56 = vld [vmem:[%s2579_s4 + $0x10] sm:$0x3]  ;;  %v1921_v50 = vor.u32 %v1988_v49, %v1920_v48 }
 0x208   : > { %v700_v58 = vld [vmem:[#allocation2 + $0x10] sm:$0x1]  ;;  %vm799_vm4 = vmand %vm798_vm14, %vm606_vm13  ;;  %vm1015_vm13 = vcmask 334848  }
 0x209   : > { %v701_v59 = vsel %vm699_vm15, %v2368_v25, %v700_v58  ;;  %vm794_vm15 = vmor %vm793_vm8, %vm792_vm7  ;;  %v789_v10 = vsel %vm787_vm10, %v786_v9, %v784_v55  ;;  %v1289_v55 = vrot.slane %v1288_v52, 2  ;;  %vm1126_vm8 = vcmask 533768   ;;  %v1972_v52 = vld [vmem:[%s2580_s5 + $0x10] sm:$0xff] }
 0x20a   : > { %702 = vst [vmem:[#allocation2 + $0x10] sm:$0x1] %v701_v59 }
 0x20b   : > { %v642_v61 = vpop.permute.xlu1 %641  ;;  %v835_v13 = vpop.permute.xlu2 %834 }
 0x20c   : > { %648 = vst.msk [vmem:[#allocation2 + $0x4] sm:$0xf] %vm647_vm2, %v642_v61  ;;  %vm838_vm2 = vcmask 330816  }
 0x20e   : > { %v691_v62 = vpop.permute.xlu0 %690  ;;  %v1750_v0 = vld [vmem:[#allocation2] sm:$0xf] }
 0x20f   : > { %697 = vst.msk [vmem:[#allocation2 + $0x4] sm:$0xf] %vm696_vm3, %v691_v62  ;;  %v1751_v2 = vor.u32 %v1949_v1, %v1750_v0  ;;  %vm797_vm3 = vmand %vm796_vm11, %vm457_vm5  ;;  %vm1191_vm11 = vcmask 27650  }
 0x210   : > { %vm800_vm9 = vmor %vm799_vm4, %vm797_vm3  ;;  %vm1318_vm3 = vcmask 1042232   ;;  %vm1319_vm4 = vcmask 60418  }
 0x211   : > { %v742_v4 = vld [vmem:[#allocation2 + $0x10] sm:$0x1]  ;;  %1034 = vmatmul.bf16.vlgmr.msrb.gmra.mxu0 %v1751_v2 }
 0x212   : > { %v743_v5 = vsel %vm741_vm6, %v2381_v32, %v742_v4  ;;  %vm840_vm6 = vcmask 327744  }
 0x213   : > { %744 = vst [vmem:[#allocation2 + $0x10] sm:$0x1] %v743_v5  ;;  %v733_v6 = vpop.permute.xlu1 %732  ;;  %vm841_vm7 = vmand %vm840_vm6, %vm457_vm5  ;;  %vm1072_vm5 = vcmask 72704   ;;  %vm1283_vm6 = vcmask 837168  }
 0x214   : > { %739 = vst.msk [vmem:[#allocation2 + $0x4] sm:$0xf] %vm738_vm12, %v733_v6  ;;  %vm1155_vm12 = vcmask 804368  }
 0x215   : > { %795 = vst.msk [vmem:[#allocation2 + $0x4] sm:$0xff] %vm794_vm15, %v788_v7  ;;  %vm1221_vm15 = vcmask 295968  }
 0x216   : > { %v833_v8 = vpop.permute.xlu0 %832 }
 0x217   : > { %839 = vst.msk [vmem:[#allocation2 + $0x8] sm:$0xf] %vm838_vm2, %v833_v8  ;;  %vm1254_vm2 = vcmask 566568  }
 0x21a   : > { %v801_v11 = vld [vmem:[#allocation2 + $0x10] sm:$0x11] }
 0x21b   : > { %v802_v12 = vsel %vm800_vm9, %v789_v10, %v801_v11  ;;  %vm1093_vm9 = vcmask 263168  }
 0x21c   : > { %803 = vst [vmem:[#allocation2 + $0x10] sm:$0x11] %v802_v12  ;;  %v1948_v15 = vld [vmem:[#allocation2 + $0x4] sm:$0xf] }
 0x21e   : > { %v1758_v19 = vld [vmem:[#allocation2 + $0x8] sm:$0xf] }
 0x223   : > { %v842_v14 = vld [vmem:[#allocation2 + $0x14] sm:$0x1]  ;;  %v1752_v16 = vld [vmem:[#allocation2 + $0xc] sm:$0x10] }
 0x224   : > { %v843_v17 = vsel %vm841_vm7, %v835_v13, %v842_v14  ;;  %v1755_v18 = vor.u32 %v1948_v15, %v1752_v16  ;;  %vm1320_vm7 = vmor %vm1319_vm4, %vm1318_vm3 }
 0x225   : > { %844 = vst [vmem:[#allocation2 + $0x14] sm:$0x1] %v843_v17 }
 0x226   : > { %1048 = vmatmul.bf16.vlgmr.msrb.gmra.mxu1 %v1755_v18 }
 0x22c   : > { %v1950_v20 = vld [vmem:[#allocation2 + $0x10] sm:$0x10] }
 0x22d   : > { %v1759_v21 = vor.u32 %v1950_v20, %v1758_v19 }
 0x22f   : > { %1836 = vmatmul.msk.bf16.vlgmr.msrb.gmra.mxu2 %vm1015_vm13, %v1759_v21 }
 0x28e   : > { %v1035_v23 = vpop.f32.mrf.mxu0 }
 0x296   : > { %v1037_v27 = vpop.f32.mrf.mxu0 }
 0x2a3   : > { %v1049_v22 = vpop.f32.mrf.mxu1 }
 0x2a4   : > { %v1050_v26 = vadd.f32 %v1049_v22, %v1035_v23 }
 0x2ab   : > { %v1051_v25 = vpop.f32.mrf.mxu1 }
 0x2ac   : > { %v1052_v29 = vadd.f32 %v1051_v25, %v1037_v27 }
 0x2b2   : > { %v1063_v24 = vpop.f32.mrf.mxu2 }
 0x2b3   : > { %v1064_v30 = vadd.f32 %v1063_v24, %v1050_v26 }
 0x2b5   : > { %v1068_v36 = vmax.f32 %v1064_v30, 0.0 }
 0x2ba   : > { %v1065_v32 = vpop.f32.mrf.mxu2 }
 0x2bb   : > { %v1066_v33 = vadd.f32 %v1065_v32, %v1052_v29 }
 0x2bd   : > { %v1069_v37 = vmax.f32 %v1066_v33, 0.0 }
 0x2bf   : > { %v1070_v38 = vpack.c.bf16 %v1069_v37, %v1068_v36  ;;  %v1977_v37 = vld [vmem:[%s2580_s5 + $0x38] sm:$0xff] }
 0x2c1   : > { %v1077_v41 = vand.u32 %v1070_v38, %v2404_v51  ;;  %v1985_v38 = vld [vmem:[%s2580_s5 + $0x78] sm:$0xff] }
 0x2c3   : > { %1086 = vmatpush.bf16.msra.mxu3 %v1077_v41  ;;  %1110 = vmatpush.bf16.msra.mxu2 %v1077_v41 }
 0x2c4   : > { %1172 = vmatpush.bf16.msra.mxu0 %v1077_v41  ;;  %1205 = vmatpush.bf16.msra.mxu1 %v1077_v41 }
 0x2c6   : > { %1837 = vmatmul.msk.bf16.vlgmr.msra.gmra.mxu3 %vm1072_vm5, %v1071_v43  ;;  %1838 = vmatmul.msk.bf16.vlgmr.msra.gmra.mxu2 %vm1072_vm5, %v1099_v42  ;;  %v1975_v42 = vld [vmem:[%s2580_s5 + $0x28] sm:$0xff] }
 0x2c7   : > { %1139 = vmatpush.bf16.msrb.mxu3 %v1077_v41  ;;  %1238 = vmatpush.bf16.msrb.mxu2 %v1077_v41  ;;  %v1983_v43 = vld [vmem:[%s2580_s5 + $0x68] sm:$0xff] }
 0x2c8   : > { %1300 = vmatpush.bf16.msrb.mxu0 %v1077_v41  ;;  %1333 = vmatpush.bf16.msrb.mxu1 %v1077_v41 }
 0x2c9   : > { %1840 = vmatmul.msk.bf16.vlgmr.msra.gmra.mxu0 %vm1072_vm5, %v1161_v44  ;;  %1841 = vmatmul.msk.bf16.vlgmr.msra.gmra.mxu1 %vm1072_vm5, %v1194_v45  ;;  %v1974_v44 = vld [vmem:[%s2580_s5 + $0x20] sm:$0xff] }
 0x2ca   : > { %v1982_v45 = vld [vmem:[%s2580_s5 + $0x60] sm:$0xff] }
 0x2cb   : > { %1267 = vmatpush.bf16.msra.mxu3 %v1077_v41  ;;  %1515 = vmatpush.bf16.msra.mxu2 %v1977_v37  ;;  %v1984_v41 = vld [vmem:[%s2580_s5 + $0x70] sm:$0xff] }
 0x2cf   : > { %1516 = vmatpush.bf16.msra.mxu2 %v1976_v40 }
 0x2d3   : > { %1517 = vmatpush.bf16.msra.mxu2 %v1975_v42 }
 0x2d6   : > { %1839 = vmatmul.msk.bf16.vlgmr.msrb.gmra.mxu3 %vm1072_vm5, %v1128_v54  ;;  %1842 = vmatmul.msk.bf16.vlgmr.msrb.gmra.mxu2 %vm1072_vm5, %v1227_v53  ;;  %v1980_v53 = vld [vmem:[%s2580_s5 + $0x50] sm:$0xff]  ;;  %v1513_v54 = vand.u32 %v1921_v50, %v2404_v51  ;;  %v1970_v51 = vld [vmem:[%s2580_s5] sm:$0xff] }
 0x2d7   : > { %1528 = vmatpush.bf16.msrb.mxu3 %v1985_v38  ;;  %1518 = vmatpush.bf16.msra.mxu2 %v1974_v44 }
 0x2d8   : > { %1546 = vmatpush.bf16.msra.mxu0 %v1513_v54 }
 0x2d9   : > { %1844 = vmatmul.msk.bf16.vlgmr.msrb.gmra.mxu0 %vm1072_vm5, %v1289_v55  ;;  %1845 = vmatmul.msk.bf16.vlgmr.msrb.gmra.mxu1 %vm1072_vm5, %v1322_v56  ;;  %v1971_v56 = vld [vmem:[%s2580_s5 + $0x8] sm:$0xff] }
 0x2db   : > { %1529 = vmatpush.bf16.msrb.mxu3 %v1984_v41  ;;  %1519 = vmatpush.bf16.msra.mxu2 %v1973_v46 }
 0x2df   : > { %1530 = vmatpush.bf16.msrb.mxu3 %v1983_v43  ;;  %1520 = vmatpush.bf16.msra.mxu2 %v1972_v52 }
 0x2e3   : > { %1531 = vmatpush.bf16.msrb.mxu3 %v1982_v45  ;;  %1521 = vmatpush.bf16.msra.mxu2 %v1971_v56 }
 0x2e6   : > { %1843 = vmatmul.msk.bf16.vlgmr.msra.gmra.mxu3 %vm1072_vm5, %v1256_v57  ;;  %v1979_v57 = vld [vmem:[%s2580_s5 + $0x48] sm:$0xff]  ;;  %vm1349_vm5 = vcmask 328768  }
 0x2e7   : > { %1532 = vmatpush.bf16.msrb.mxu3 %v1981_v47  ;;  %1522 = vmatpush.bf16.msra.mxu2 %v1970_v51 }
 0x2eb   : > { %1533 = vmatpush.bf16.msrb.mxu3 %v1980_v53 }
 0x2ef   : > { %1534 = vmatpush.bf16.msrb.mxu3 %v1979_v57 }
 0x346   : > { %v1174_v58 = vpop.f32.mrf.mxu0  ;;  %v1207_v60 = vpop.f32.mrf.mxu1 }
 0x347   : > { %v1178_v59 = vpack.c.bf16 %v1174_v58, %v1174_v58  ;;  %v1211_v62 = vpack.c.bf16 %v1207_v60, %v1207_v60  ;;  %v1987_v58 = vld [vmem:[%s2580_s5 + $0x88] sm:$0xff]  ;;  %v1978_v60 = vld [vmem:[%s2580_s5 + $0x40] sm:$0xff] }
 0x348   : > { %1547 = vmatpush.bf16.msra.mxu0 %v1987_v58  ;;  %1535 = vmatpush.bf16.msrb.mxu3 %v1978_v60 }
 0x349   : > { %v1180_v61 = vrot.slane %v1178_v59, 2  ;;  %v1088_v63 = vpop.f32.mrf.mxu3  ;;  %v1112_v0 = vpop.f32.mrf.mxu2  ;;  %v1213_v4 = vrot.slane %v1211_v62, 2 }
 0x34a   : > { %v1092_v2 = vpack.c.bf16 %v1088_v63, %v1088_v63  ;;  %v1116_v3 = vpack.c.bf16 %v1112_v0, %v1112_v0 }
 0x34b   : > { %v1183_v1 = vsel %vm434_vm1, %v1178_v59, %v1180_v61  ;;  %v1216_v9 = vsel %vm434_vm1, %v1211_v62, %v1213_v4  ;;  %v1986_v61 = vld [vmem:[%s2580_s5 + $0x80] sm:$0xff] }
 0x34c   : > { %1185 = vrot.lane.b32.xlu1 %v1183_v1, %s2107_s12  ;;  %1094 = vst.msk [vmem:[#allocation3] sm:$0x3] %vm1093_vm9, %v1092_v2  ;;  %v1118_v5 = vrot.slane %v1116_v3, 2  ;;  %1548 = vmatpush.bf16.msra.mxu0 %v1986_v61  ;;  %s1584_s12 = sshll.u32 %s1580_s19, 4  ;;  %s1585_s12 = int_to_ptr.hbm [resolvable:$true] %s1584_s12 }
 0x34e   : > { %v1176_v6 = vpop.f32.mrf.mxu0  ;;  %v1209_v7 = vpop.f32.mrf.mxu1  ;;  %v1121_v8 = vsel %vm434_vm1, %v1116_v3, %v1118_v5 }
 0x34f   : > { %1123 = vrot.lane.b32.xlu2 %v1121_v8, %s2105_s10  ;;  %s2586_s10 = smov 70  }
 0x351   : > { %v1090_v10 = vpop.f32.mrf.mxu3  ;;  %v1114_v11 = vpop.f32.mrf.mxu2 }
 0x352   : > { %v2114_v11 = vmov 4.0  }
 0x353   : > { %2039 = vrcp.f32 %v2114_v11 }
 0x354   : > { %1218 = vrot.lane.b32.xlu1 %v1216_v9, %s2108_s13  ;;  %s1572_s13 = scalar_lea.sflag [#allocation5], %s242_s29 }
 0x356   : > { %v1302_v12 = vpop.f32.mrf.mxu0  ;;  %v1335_v14 = vpop.f32.mrf.mxu1 }
 0x357   : > { %v1306_v13 = vpack.c.bf16 %v1302_v12, %v1302_v12  ;;  %v1339_v16 = vpack.c.bf16 %v1335_v14, %v1335_v14 }
 0x359   : > { %v1308_v15 = vrot.slane %v1306_v13, 2  ;;  %v1141_v17 = vpop.f32.mrf.mxu3  ;;  %v1240_v18 = vpop.f32.mrf.mxu2  ;;  %v1341_v21 = vrot.slane %v1339_v16, 2 }
 0x35a   : > { %v1145_v20 = vpack.c.bf16 %v1141_v17, %v1141_v17  ;;  %v1244_v23 = vpack.c.bf16 %v1240_v18, %v1240_v18 }
 0x35b   : > { %v1311_v19 = vsel %vm434_vm1, %v1306_v13, %v1308_v15  ;;  %v1344_v27 = vsel %vm434_vm1, %v1339_v16, %v1341_v21  ;;  %v2040_v13 = vpop.eup %2039 }
 0x35c   : > { %1313 = vrot.lane.b32.xlu2 %v1311_v19, %s2110_s15  ;;  %v1147_v22 = vrot.slane %v1145_v20, 2  ;;  %v1246_v28 = vrot.slane %v1244_v23, 2  ;;  %v1563_v17 = vmul.f32 4.0, %v2040_v13  ;;  %s2055_s15 = sshra.s32 %s1585_s12, 4  ;;  %s2056_s15 = int_to_ptr.hbm [resolvable:$true] %s2055_s15 }
 0x35d   : > { %p2062_p0 = scmp.lt.s32.totalorder %s2056_s15, %s2581_s6 }
 0x35e   : > { %v1304_v24 = vpop.f32.mrf.mxu0  ;;  %v1337_v25 = vpop.f32.mrf.mxu1  ;;  %v1150_v26 = vsel %vm434_vm1, %v1145_v20, %v1147_v22  ;;  %v1249_v31 = vsel %vm434_vm1, %v1244_v23, %v1246_v28  ;;  %v1564_v21 = vsub.f32 1.0, %v1563_v17 }
 0x35f   : > { %1152 = vrot.lane.b32.xlu0 %v1150_v26, %s2106_s11 }
 0x360   : > { %v1565_v26 = vmul.f32 %v2040_v13, %v1564_v21 }
 0x361   : > { %v1143_v29 = vpop.f32.mrf.mxu3  ;;  %v1242_v30 = vpop.f32.mrf.mxu2 }
 0x362   : > { %v1566_v29 = vadd.f32 %v2040_v13, %v1565_v26 }
 0x364   : > { %1346 = vrot.lane.b32.xlu2 %v1344_v27, %s2112_s17 }
 0x367   : > { %1251 = vrot.lane.b32.xlu0 %v1249_v31, %s2109_s14  ;;  %s2057_s14 = scalar_lea.hbm %s2056_s15, 1 }
 0x368   : > { %p2058_p11 = scmp.ne.s32.totalorder %s2056_s15, %s2057_s14  ;;  %p2063_p1 = scmp.lt.s32.totalorder %s2061_s20, %s2057_s14 }
 0x369   : > { %v1269_v32 = vpop.f32.mrf.mxu3 }
 0x36a   : > { %v1273_v33 = vpack.c.bf16 %v1269_v32, %v1269_v32  ;;  %p2059_p12 = pnand %p2058_p11, %p2188_p5  ;;  %p2064_p2 = por %p2063_p1, %p2062_p0 }
 0x36c   : > { %v1275_v34 = vrot.slane %v1273_v33, 2  ;;  %p2060_p13 = pneg %p2059_p12 }
 0x36e   : > { %v1278_v35 = vsel %vm434_vm1, %v1273_v33, %v1275_v34  ;;  %vm1190_vm1 = vcmask 1042200   ;;  %p2065_p3 = pnand %p2064_p2, %p2060_p13 }
 0x36f   : > { %1280 = vrot.lane.b32.xlu1 %v1278_v35, %s2586_s10  ;;  %vm1192_vm14 = vmor %vm1191_vm11, %vm1190_vm1  ;;  %s243_s10 = scalar_lea.vmem [#allocation4], %s242_s29 }
 0x370   : > { %s1582_s11 = sshll.u32 %s243_s10, 4  ;;  %s1583_s11 = int_to_ptr.vmem [resolvable:$true] %s1582_s11 }
 0x371   : > { %v1271_v36 = vpop.f32.mrf.mxu3 }
 0x3a9   : > { %v1124_v39 = vpop.permute.xlu2 %1123 }
 0x3aa   : > { %1127 = vst.msk [vmem:[#allocation3] sm:$0x3] %vm1126_vm8, %v1124_v39 }
 0x3b6   : > { %v1314_v2 = vpop.permute.xlu2 %1313 }
 0x3b7   : > { %v1315_v3 = vrot.slane %v1314_v2, 6 }
 0x3b9   : > { %v1316_v5 = vsel %vm787_vm10, %v1315_v3, %v1314_v2  ;;  %vm1567_vm10 = vweird.f32 %v2040_v13 }
 0x3ba   : > { %v1568_v32 = vsel %vm1567_vm10, %v2040_v13, %v1566_v29 }
 0x3be   : > { %v1186_v55 = vpop.permute.xlu1 %1185  ;;  %v1347_v6 = vpop.permute.xlu2 %1346 }
 0x3bf   : > { %v1187_v59 = vrot.slane %v1186_v55, 6 }
 0x3c1   : > { %v1188_v0 = vsel %vm594_vm0, %v1187_v59, %v1186_v55  ;;  %vm2587_vm0 = vcmask 1043456  }
 0x3c6   : > { %v1219_v63 = vpop.permute.xlu1 %1218 }
 0x3d1   : > { %v1153_v62 = vpop.permute.xlu0 %1152 }
 0x3d2   : > { %1156 = vst.msk [vmem:[#allocation3] sm:$0x3] %vm1155_vm12, %v1153_v62 }
 0x3d3   : > { %1193 = vst.msk [vmem:[#allocation3] sm:$0xf] %vm1192_vm14, %v1188_v0 }
 0x3d4   : > { %1222 = vst.msk [vmem:[#allocation3 + $0x2] sm:$0x3] %vm1221_vm15, %v1219_v63 }
 0x3d9   : > { %v1252_v1 = vpop.permute.xlu0 %1251 }
 0x3da   : > { %1255 = vst.msk [vmem:[#allocation3 + $0x2] sm:$0x3] %vm1254_vm2, %v1252_v1 }
 0x3e1   : > { %v1281_v4 = vpop.permute.xlu1 %1280 }
 0x3e2   : > { %1284 = vst.msk [vmem:[#allocation3 + $0x2] sm:$0x3] %vm1283_vm6, %v1281_v4 }
 0x3e3   : > { %1321 = vst.msk [vmem:[#allocation3 + $0x2] sm:$0xf] %vm1320_vm7, %v1316_v5 }
 0x3e4   : > { %1350 = vst.msk [vmem:[#allocation3 + $0x4] sm:$0x3] %vm1349_vm5, %v1347_v6 }
 0x3eb   : > { %v1351_v7 = vld [vmem:[#allocation3] sm:$0x3f] }
 0x3ec   : > { %1391 = vst [vmem:[#allocation1] ss:$4 sm:$0xff] %v1351_v7 }
 0x3f3   : > { %v1392_v8 = vld.sshfl [vmem:[#allocation1] sm:$0xff pattern:$0x73625140]  ;;  %v1393_v9 = vld.sshfl [vmem:[#allocation1 + $0x8] sm:$0xff pattern:$0x73625140] }
 0x3f4   : > { %1523 = vmatmul.bf16.vlgmr.msra.gmra.mxu2 %v1392_v8  ;;  %1536 = vmatmul.bf16.vlgmr.msrb.gmra.mxu3 %v1393_v9  ;;  %v1394_v10 = vld.sshfl [vmem:[#allocation1 + $0x10] sm:$0xff pattern:$0x73625140] }
 0x3f5   : > { %1922 = vmatmul.msk.bf16.vlgmr.msra.gmra.mxu0 %vm1015_vm13, %v1394_v10 }
 0x472   : > { %v1550_v12 = vpop.f32.mrf.mxu0 }
 0x477   : > { %v1524_v14 = vpop.f32.mrf.mxu2  ;;  %v1537_v15 = vpop.f32.mrf.mxu3 }
 0x478   : > { %v1538_v16 = vadd.f32 %v1537_v15, %v1524_v14 }
 0x47a   : > { %v1551_v18 = vadd.f32 %v1550_v12, %v1538_v16  ;;  %v1552_v19 = vpop.f32.mrf.mxu0 }
 0x47c   : > { %v1554_v20 = vmax.f32 %v1551_v18, 0.0 }
 0x47e   : > { %v1555_v22 = vsel %vm2587_vm0, %v1554_v20, 0.0 }
 0x47f   : > { %v1556_v23 = vrot.slane %v1555_v22, 4  ;;  %v1526_v24 = vpop.f32.mrf.mxu2  ;;  %v1539_v25 = vpop.f32.mrf.mxu3 }
 0x481   : > { %v1557_v27 = vadd.f32 %v1556_v23, %v1555_v22 }
 0x483   : > { %v1558_v28 = vrot.slane %v1557_v27, 2 }
 0x485   : > { %v1559_v30 = vadd.f32 %v1558_v28, %v1557_v27 }
 0x487   : > { %v1560_v31 = vrot.slane %v1559_v30, 1 }
 0x489   : > { %v1561_v33 = vadd.f32 %v1560_v31, %v1559_v30 }
 0x48b   : > { %v1569_v34 = vmul.f32 %v1568_v32, %v1561_v33 }
 0x48d   : > { %1570 = vst [vmem:[%s243_s10] sm:$0x1] %v1569_v34 }
 0x48e   : > { %2068 = shalt.err (!%p2065_p3)
}
 0x48f   : > { %1990 = dma.vmem_to_hbm [thread:$0]  (%p2188_p5), %s1583_s11, 16, %s1585_s12, %s1572_s13  }
 0x490 PF: > { %p1996_p4 = scmp.ge.s32.totalorder %s2103_s24, 2  ;;  %s1596_s16 = sand.u32 1, %s2091_s21  }
 0x491   : > { %s1597_s29 = scalar_lea.sflag [#allocation5], %s1596_s16 }
 0x492   : > { %p1993_p7 = pnand %p1996_p4, %p2192_p6 }
 0x494   : > { %p1994_p8 = pneg %p1993_p7 }
 0x496   : > { %2086 = dma.done.wait (%p1994_p8), %s1597_s29, 16  }
 0x497   : > { %2088 = vsyncadd (%p1994_p8), %s1597_s29, 4294967280  ;;  %p16_p9 = scmp.ge.s32.totalorder %s2175_s27, 4   ;;  %s2588_s21 = smov %s2095_s22 }
 0x498   : > { %s2589_s22 = smov %s2099_s23  ;;  %s2590_s23 = smov %s2186_s30 }
 0x499   : > { %s2591_s24 = smov %s2175_s27  ;;  %18 = sbr.rel (!%p16_p9) target bundleno = 3 (0x3), region = 79 }
 0x49e   :  { %1602 = vsyncpa [#allocation5], 1 }
 0x49f   :  { %1604 = vsyncpa [#allocation5 + $0x1], 1 }

</bundles_post_ra>
